<compile_context>
chip_gen: v7x
topology: tpu7x:2x2x1
jax: 0.10.0
libtpu: 0.0.40
codegen_flags: <defaults>
</compile_context>

<pallas_src>
import math

import jax
import jax.numpy as jnp
import numpy as np
from jax import lax
from jax.experimental import pallas as pl
from jax.experimental.pallas import tpu as pltpu

LN_EPS = 1e-5  # PyTorch nn.LayerNorm default


# ----------------------------- kernel -------------------------------------- #

def _layernorm(z, w, b):
    m = jnp.mean(z, axis=-1, keepdims=True)
    v = jnp.mean((z - m) ** 2, axis=-1, keepdims=True)
    return (z - m) * lax.rsqrt(v + LN_EPS) * w + b


def _make_kernel(num_layers, heads, key_dim, value_dim, ff_size):
    """Builds the fused forward kernel with the model statics baked in."""
    L, H, K, V, F = num_layers, heads, key_dim, value_dim, ff_size
    HK = H * K
    QKOFF = 2 * HK
    DQKV = 2 * HK + H * V
    BF = jnp.bfloat16

    def kernel(x_ref, mask_ref, wtok_ref, posb_ref, vecs_ref,
               wqkv_ref, wo_ref, wff_ref, wout_ref, bout_ref, o_ref):
        # ---- token embedding + position embedding (whole flattened batch) ----
        x = (jnp.dot(x_ref[...].astype(BF), wtok_ref[...],
                     preferred_element_type=jnp.float32)
             + posb_ref[...])                                     # (N, F) f32

        # Block-diagonal additive mask over the flattened batch (pre-built).
        mask_bias = mask_ref[...]                                 # (N, N) f32

        for l in range(L):                                        # static unroll
            vec = vecs_ref[l]                                     # (7, P) f32
            ln1w, ln1b = vec[0:1, :F], vec[1:2, :F]
            bqkv = vec[2:3, :DQKV]                                # q-part pre-scaled
            bo = vec[3:4, :F]
            ln2w, ln2b = vec[4:5, :F], vec[5:6, :F]
            bff = vec[6:7, :F]

            # ---- multi-head attention (fused QKV projection) ----
            x1 = _layernorm(x, ln1w, ln1b)
            qkv = (jnp.dot(x1.astype(BF), wqkv_ref[l],
                           preferred_element_type=jnp.float32) + bqkv)  # (N, DQKV)

            head_outs = []
            for h in range(H):                                    # static unroll
                q = qkv[:, h * K:(h + 1) * K].astype(BF)                  # (N, K)
                k = qkv[:, HK + h * K: HK + (h + 1) * K].astype(BF)       # (N, K)
                v = qkv[:, QKOFF + h * V: QKOFF + (h + 1) * V].astype(BF)  # (N, V)
                # scores: contract last-vs-last (q @ k^T), scale folded into wq/bq
                s = lax.dot_general(q, k, (((1,), (1,)), ((), ())),
                                    preferred_element_type=jnp.float32)    # (N, N)
                s = s + mask_bias
                s = s - jnp.max(s, axis=-1, keepdims=True)
                e = jnp.exp(s)
                p = e / jnp.sum(e, axis=-1, keepdims=True)
                # TODO(synk): attention-prob / FF dropout are identity in eval mode.
                head_outs.append(jnp.dot(p.astype(BF), v,
                                         preferred_element_type=jnp.float32))  # (N, V)

            concat = jnp.concatenate(head_outs, axis=-1)           # (N, H*V)
            attn = (jnp.dot(concat.astype(BF), wo_ref[l],
                            preferred_element_type=jnp.float32) + bo)
            x = x + attn

            # ---- feed-forward ----
            y = _layernorm(x, ln2w, ln2b)
            x = x + (jnp.dot(y.astype(BF), wff_ref[l],
                             preferred_element_type=jnp.float32) + bff)

        # ---- final projection to (lane-padded) vocab ----
        o_ref[...] = (jnp.dot(x.astype(BF), wout_ref[...],
                              preferred_element_type=jnp.float32)
                      + bout_ref[...])

    return kernel


# ----------------------------- wrapper ------------------------------------- #

class TransformerPallas:
    def __init__(self, key, *, num_layers=2, layer_size=16, num_heads=2,
                 feed_forward_size=32, vocab_size=16, input_token_emb_dim=32,
                 max_seq_len=64, n_batch_splits=1):
        self.num_layers = num_layers
        self.heads = num_heads
        self.key_dim = layer_size
        self.value_dim = layer_size
        self.ff = feed_forward_size
        self.vocab = vocab_size
        self.emb_dim = input_token_emb_dim
        self.max_seq_len = max_seq_len
        self.vocab_pad = ((vocab_size + 127) // 128) * 128   # lane-dense output
        # 1 (single grid step) is best on single-TC v5e/v6e; use 2 on v7x so the
        # "parallel" batch-split axis maps one half per TensorCore.
        self.n_batch_splits = n_batch_splits

        def lin(key, din, dout):
            kw, kb = jax.random.split(key)
            w = jax.random.normal(kw, (din, dout), jnp.float32) * 0.05  # [in,out]
            b = jax.random.normal(kb, (1, dout), jnp.float32) * 0.05
            return w, b

        keys = jax.random.split(key, 3 + num_layers)
        self.w_tok, self.b_tok = lin(keys[0], input_token_emb_dim, feed_forward_size)
        self.pos_table = jax.random.normal(
            keys[1], (max_seq_len, feed_forward_size), jnp.float32) * 0.05
        self.w_out, self.b_out = lin(keys[2], feed_forward_size, vocab_size)

        self.layers = []
        H, K, V, F = num_heads, self.key_dim, self.value_dim, feed_forward_size
        for l in range(num_layers):
            lk = jax.random.split(keys[3 + l], 6)
            p = dict()
            p["ln1_w"] = jnp.ones((1, F), jnp.float32)
            p["ln1_b"] = jnp.zeros((1, F), jnp.float32)
            p["wq"], p["bq"] = lin(lk[0], F, H * K)
            p["wk"], p["bk"] = lin(lk[1], F, H * K)
            p["wv"], p["bv"] = lin(lk[2], F, H * V)
            p["wo"], p["bo"] = lin(lk[3], H * V, F)
            p["ln2_w"] = jnp.ones((1, F), jnp.float32)
            p["ln2_b"] = jnp.zeros((1, F), jnp.float32)
            p["wff"], p["bff"] = lin(lk[4], F, F)
            self.layers.append(p)

        self._build_kernel_params()

    def _build_kernel_params(self):
        """Pack per-layer weights into stacked, MXU-friendly slabs (bf16 matrices)."""
        H, K, V, F, L = self.heads, self.key_dim, self.value_dim, self.ff, self.num_layers
        HK, HV = H * K, H * V
        DQKV = 2 * HK + HV
        P = max(F, DQKV)
        scale = 1.0 / math.sqrt(K)

        def row(v):
            r = jnp.zeros((P,), jnp.float32)
            return r.at[:v.size].set(v.reshape(-1).astype(jnp.float32))

        wqkv, wo, wff, vecs = [], [], [], []
        for p in self.layers:
            # Fused QKV weight: columns = [Q (scaled) | K | V], head-major per block.
            wqkv.append(jnp.concatenate([p["wq"] * scale, p["wk"], p["wv"]], axis=1))
            wo.append(p["wo"])          # native (H*V, F) layout
            wff.append(p["wff"])
            bqkv = jnp.concatenate([p["bq"].reshape(-1) * scale,
                                    p["bk"].reshape(-1), p["bv"].reshape(-1)])
            vecs.append(jnp.stack([
                row(p["ln1_w"]), row(p["ln1_b"]),
                row(bqkv), row(p["bo"]),
                row(p["ln2_w"]), row(p["ln2_b"]),
                row(p["bff"])]))

        self.k_wqkv = jnp.stack(wqkv).astype(jnp.bfloat16)   # (L, F, DQKV)
        self.k_wo = jnp.stack(wo).astype(jnp.bfloat16)       # (L, HV, F)
        self.k_wff = jnp.stack(wff).astype(jnp.bfloat16)     # (L, F, F)
        self.k_vecs = jnp.stack(vecs)                        # (L, 7, P) f32
        self.k_wtok = self.w_tok.astype(jnp.bfloat16)        # (E, F)

        VP = self.vocab_pad
        self.k_wout = (jnp.zeros((F, VP), jnp.float32)
                       .at[:, :self.vocab].set(self.w_out)).astype(jnp.bfloat16)
        self.k_bout = jnp.zeros((1, VP), jnp.float32).at[:, :self.vocab].set(self.b_out)

    def __call__(self, inputs, attention_mask):
        B, T, E = inputs.shape
        F, H, K, V = self.ff, self.heads, self.key_dim, self.value_dim
        L, VP = self.num_layers, self.vocab_pad
        HK, HV = H * K, H * V
        DQKV = 2 * HK + HV
        P = max(F, DQKV)

        G = self.n_batch_splits
        assert B % G == 0, "batch must be divisible by n_batch_splits"
        Bs = B // G
        N = Bs * T
        Ntot = B * T

        # Flatten batch for lane/sublane-dense matmuls.
        x2d = inputs.reshape(Ntot, E)
        # Position embedding (+ token-emb bias), pre-tiled per batch split.
        posb = jnp.tile(self.pos_table[:T] + self.b_tok, (Bs, 1))   # (N, F)

        # Block-diagonal additive mask: user mask within a batch element,
        # -1e9 between different batch elements.
        bias_small = jnp.where(attention_mask == 0.0, -1e9, 0.0).astype(jnp.float32)
        eye = jnp.eye(Bs, dtype=jnp.float32)
        mask_full = (jnp.kron(eye, bias_small)
                     + jnp.kron(1.0 - eye, jnp.full((T, T), -1e9, jnp.float32)))

        const2 = lambda i: (0, 0)
        const3 = lambda i: (0, 0, 0)

        in_specs = [
            pl.BlockSpec((N, E), lambda i: (i, 0)),     # flattened inputs (per split)
            pl.BlockSpec((N, N), const2),               # block-diag mask bias
            pl.BlockSpec((E, F), const2),               # w_tok (bf16)
            pl.BlockSpec((N, F), const2),               # pos + b_tok (pre-tiled)
            pl.BlockSpec((L, 7, P), const3),            # packed LN/bias slab (f32)
            pl.BlockSpec((L, F, DQKV), const3),         # fused W_qkv (bf16, Q scaled)
            pl.BlockSpec((L, HV, F), const3),           # W_o (bf16)
            pl.BlockSpec((L, F, F), const3),            # W_ff (bf16)
            pl.BlockSpec((F, VP), const2),              # W_out (bf16, vocab-padded)
            pl.BlockSpec((1, VP), const2),              # b_out (f32, vocab-padded)
        ]
        out_specs = pl.BlockSpec((N, VP), lambda i: (i, 0))

        args = (x2d, mask_full, self.k_wtok, posb, self.k_vecs,
                self.k_wqkv, self.k_wo, self.k_wff, self.k_wout, self.k_bout)

        flops = (2 * Ntot * E * F
                 + L * (2 * Ntot * F * DQKV + 2 * H * Ntot * N * K
                        + 2 * H * Ntot * N * V + 2 * Ntot * HV * F
                        + 2 * Ntot * F * F)
                 + 2 * Ntot * F * VP)
        transcendentals = L * (H * Ntot * N + 4 * Ntot)
        bytes_accessed = (sum(int(np.prod(a.shape)) * a.dtype.itemsize for a in args)
                          + Ntot * VP * 4)

        kernel = _make_kernel(L, H, K, V, F)

        logits_p = pl.pallas_call(
            kernel,
            out_shape=jax.ShapeDtypeStruct((Ntot, VP), jnp.float32),
            grid_spec=pltpu.PrefetchScalarGridSpec(
                num_scalar_prefetch=0,
                grid=(G,),
                in_specs=in_specs,
                out_specs=out_specs),
            compiler_params=pltpu.CompilerParams(
                dimension_semantics=("parallel",)),
            cost_estimate=pl.CostEstimate(
                flops=int(flops),
                transcendentals=int(transcendentals),
                bytes_accessed=int(bytes_accessed)),
        )(*args)

        logits = logits_p[:, :self.vocab].reshape(B, T, self.vocab)
        # return_attention_scores=False -> empty scores list
        return logits, []


# ------------------------- pure-JAX reference ------------------------------ #

def reference_forward(model: TransformerPallas, inputs, mask):
    def ln(z, w, b):
        m = jnp.mean(z, -1, keepdims=True)
        v = jnp.mean((z - m) ** 2, -1, keepdims=True)
        return (z - m) / jnp.sqrt(v + LN_EPS) * w + b

    B, T, _ = inputs.shape
    H, K, V = model.heads, model.key_dim, model.value_dim
    x = inputs @ model.w_tok + model.b_tok + model.pos_table[:T][None]
    for p in model.layers:
        x1 = ln(x, p["ln1_w"], p["ln1_b"])
        q = (x1 @ p["wq"] + p["bq"]).reshape(B, T, H, K).transpose(0, 2, 1, 3)
        k = (x1 @ p["wk"] + p["bk"]).reshape(B, T, H, K).transpose(0, 2, 1, 3)
        v = (x1 @ p["wv"] + p["bv"]).reshape(B, T, H, V).transpose(0, 2, 1, 3)
        s = jnp.einsum("bhtk,bhsk->bhts", q, k) / math.sqrt(K)
        s = jnp.where(mask[None, None] == 0.0, -1e9, s)
        prob = jax.nn.softmax(s, axis=-1)
        o = jnp.einsum("bhts,bhsv->bhtv", prob, v).transpose(0, 2, 1, 3).reshape(B, T, H * V)
        x = x + (o @ p["wo"] + p["bo"])
        y = ln(x, p["ln2_w"], p["ln2_b"])
        x = x + (y @ p["wff"] + p["bff"])
    return x @ model.w_out + model.b_out


# --------------------------------- main ------------------------------------ #

if __name__ == "__main__":
    key = jax.random.PRNGKey(0)
    k_param, k_in = jax.random.split(key)

    B, T, E = 2, 8, 32
    model = TransformerPallas(k_param, num_layers=2, layer_size=16, num_heads=2,
                              feed_forward_size=32, vocab_size=16,
                              input_token_emb_dim=E, max_seq_len=64,
                              n_batch_splits=1)

    inputs = jax.random.normal(k_in, (B, T, E), jnp.float32)
    # causal attention mask, float, nonzero = attend
    attention_mask = jnp.tril(jnp.ones((T, T), jnp.float32))

    logits, scores = model(inputs, attention_mask)
    logits = jax.block_until_ready(logits)

    ref = reference_forward(model, inputs, attention_mask)
    # Tolerance is set for bf16 MXU inputs (f32 accumulation); f32 reference.
    np.testing.assert_allclose(np.asarray(logits), np.asarray(ref),
                               rtol=3e-2, atol=3e-2)
    print("KERNEL_OK")
</pallas_src>

<mosaic_0001>
module attributes {stable_mosaic.version = 11 : i64} {
  func.func @kernel(%arg0: i32, %arg1: memref<16x32xf32, #tpu.memory_space<vmem>>, %arg2: memref<16x16xf32, #tpu.memory_space<vmem>>, %arg3: memref<32x32xbf16, #tpu.memory_space<vmem>>, %arg4: memref<16x32xf32, #tpu.memory_space<vmem>>, %arg5: memref<2x7x96xf32, #tpu.memory_space<vmem>>, %arg6: memref<2x32x96xbf16, #tpu.memory_space<vmem>>, %arg7: memref<2x32x32xbf16, #tpu.memory_space<vmem>>, %arg8: memref<2x32x32xbf16, #tpu.memory_space<vmem>>, %arg9: memref<32x128xbf16, #tpu.memory_space<vmem>>, %arg10: memref<1x128xf32, #tpu.memory_space<vmem>>, %arg11: memref<16x128xf32, #tpu.memory_space<vmem>>) attributes {dimension_semantics = [#tpu.dimension_semantics<parallel>], iteration_bounds = array<i64: 1>, scalar_prefetch = 0 : i64, scratch_operands = 0 : i64, tpu.core_type = #tpu.core_type<tc>, window_params = [{transform_indices = @transform_0, window_bounds = array<i64: 16, 32>}, {pipeline_mode = #tpu.pipeline_mode<synchronous>, transform_indices = @transform_1, window_bounds = array<i64: 16, 16>}, {pipeline_mode = #tpu.pipeline_mode<synchronous>, transform_indices = @transform_2, window_bounds = array<i64: 32, 32>}, {pipeline_mode = #tpu.pipeline_mode<synchronous>, transform_indices = @transform_3, window_bounds = array<i64: 16, 32>}, {pipeline_mode = #tpu.pipeline_mode<synchronous>, transform_indices = @transform_4, window_bounds = array<i64: 2, 7, 96>}, {pipeline_mode = #tpu.pipeline_mode<synchronous>, transform_indices = @transform_5, window_bounds = array<i64: 2, 32, 96>}, {pipeline_mode = #tpu.pipeline_mode<synchronous>, transform_indices = @transform_6, window_bounds = array<i64: 2, 32, 32>}, {pipeline_mode = #tpu.pipeline_mode<synchronous>, transform_indices = @transform_7, window_bounds = array<i64: 2, 32, 32>}, {pipeline_mode = #tpu.pipeline_mode<synchronous>, transform_indices = @transform_8, window_bounds = array<i64: 32, 128>}, {pipeline_mode = #tpu.pipeline_mode<synchronous>, transform_indices = @transform_9, window_bounds = array<i64: 1, 128>}, {transform_indices = @transform_10, window_bounds = array<i64: 16, 128>}]} {
    %c0 = arith.constant 0 : index
    %c0_0 = arith.constant 0 : index
    %0 = vector.load %arg1[%c0, %c0_0] : memref<16x32xf32, #tpu.memory_space<vmem>>, vector<16x32xf32>
    %1 = arith.truncf %0 : vector<16x32xf32> to vector<16x32xbf16>
    %c0_1 = arith.constant 0 : index
    %c0_2 = arith.constant 0 : index
    %2 = vector.load %arg3[%c0_1, %c0_2] : memref<32x32xbf16, #tpu.memory_space<vmem>>, vector<32x32xbf16>
    %cst = arith.constant dense<0.000000e+00> : vector<16x32xf32>
    %3 = tpu.matmul %1, %2, %cst {dimension_numbers = #tpu.dot_dimension_numbers<[1], [0], [0], [1], [0, 0, 1, 1], [], []>} : vector<16x32xbf16>, vector<32x32xbf16>, vector<16x32xf32> -> vector<16x32xf32>
    %c0_3 = arith.constant 0 : index
    %c0_4 = arith.constant 0 : index
    %4 = vector.load %arg4[%c0_3, %c0_4] : memref<16x32xf32, #tpu.memory_space<vmem>>, vector<16x32xf32>
    %5 = arith.addf %3, %4 : vector<16x32xf32>
    %c0_5 = arith.constant 0 : index
    %c0_6 = arith.constant 0 : index
    %6 = vector.load %arg2[%c0_5, %c0_6] : memref<16x16xf32, #tpu.memory_space<vmem>>, vector<16x16xf32>
    %c0_7 = arith.constant 0 : index
    %c0_8 = arith.constant 0 : index
    %c0_9 = arith.constant 0 : index
    %7 = vector.load %arg5[%c0_7, %c0_8, %c0_9] : memref<2x7x96xf32, #tpu.memory_space<vmem>>, vector<1x7x96xf32>
    %8 = vector.shape_cast %7 : vector<1x7x96xf32> to vector<7x96xf32>
    %9 = vector.extract_strided_slice %8 {offsets = [0, 0], sizes = [1, 32], strides = [1, 1]} : vector<7x96xf32> to vector<1x32xf32>
    %10 = vector.extract_strided_slice %8 {offsets = [1, 0], sizes = [1, 32], strides = [1, 1]} : vector<7x96xf32> to vector<1x32xf32>
    %11 = vector.extract_strided_slice %8 {offsets = [2, 0], sizes = [1, 96], strides = [1, 1]} : vector<7x96xf32> to vector<1x96xf32>
    %12 = vector.extract_strided_slice %8 {offsets = [3, 0], sizes = [1, 32], strides = [1, 1]} : vector<7x96xf32> to vector<1x32xf32>
    %13 = vector.extract_strided_slice %8 {offsets = [4, 0], sizes = [1, 32], strides = [1, 1]} : vector<7x96xf32> to vector<1x32xf32>
    %14 = vector.extract_strided_slice %8 {offsets = [5, 0], sizes = [1, 32], strides = [1, 1]} : vector<7x96xf32> to vector<1x32xf32>
    %15 = vector.extract_strided_slice %8 {offsets = [6, 0], sizes = [1, 32], strides = [1, 1]} : vector<7x96xf32> to vector<1x32xf32>
    %cst_10 = arith.constant dense<0.000000e+00> : vector<16xf32>
    %16 = vector.multi_reduction <add>, %5, %cst_10 [1] : vector<16x32xf32> to vector<16xf32>
    %17 = vector.shape_cast %16 : vector<16xf32> to vector<16x1xf32>
    %cst_11 = arith.constant 3.200000e+01 : f32
    %18 = vector.broadcast %cst_11 : f32 to vector<16x1xf32>
    %19 = arith.divf %17, %18 : vector<16x1xf32>
    %20 = vector.broadcast %19 : vector<16x1xf32> to vector<16x32xf32>
    %21 = arith.subf %5, %20 : vector<16x32xf32>
    %22 = arith.mulf %21, %21 : vector<16x32xf32>
    %cst_12 = arith.constant dense<0.000000e+00> : vector<16xf32>
    %23 = vector.multi_reduction <add>, %22, %cst_12 [1] : vector<16x32xf32> to vector<16xf32>
    %24 = vector.shape_cast %23 : vector<16xf32> to vector<16x1xf32>
    %cst_13 = arith.constant 3.200000e+01 : f32
    %25 = vector.broadcast %cst_13 : f32 to vector<16x1xf32>
    %26 = arith.divf %24, %25 : vector<16x1xf32>
    %27 = vector.broadcast %19 : vector<16x1xf32> to vector<16x32xf32>
    %28 = arith.subf %5, %27 : vector<16x32xf32>
    %cst_14 = arith.constant 9.99999974E-6 : f32
    %29 = vector.broadcast %cst_14 : f32 to vector<16x1xf32>
    %30 = arith.addf %26, %29 : vector<16x1xf32>
    %31 = math.rsqrt %30 : vector<16x1xf32>
    %32 = vector.broadcast %31 : vector<16x1xf32> to vector<16x32xf32>
    %33 = arith.mulf %28, %32 : vector<16x32xf32>
    %34 = vector.broadcast %9 : vector<1x32xf32> to vector<16x32xf32>
    %35 = arith.mulf %33, %34 : vector<16x32xf32>
    %36 = vector.broadcast %10 : vector<1x32xf32> to vector<16x32xf32>
    %37 = arith.addf %35, %36 : vector<16x32xf32>
    %38 = arith.truncf %37 : vector<16x32xf32> to vector<16x32xbf16>
    %c0_15 = arith.constant 0 : index
    %c0_16 = arith.constant 0 : index
    %c0_17 = arith.constant 0 : index
    %39 = vector.load %arg6[%c0_15, %c0_16, %c0_17] : memref<2x32x96xbf16, #tpu.memory_space<vmem>>, vector<1x32x96xbf16>
    %40 = vector.shape_cast %39 : vector<1x32x96xbf16> to vector<32x96xbf16>
    %cst_18 = arith.constant dense<0.000000e+00> : vector<16x96xf32>
    %41 = tpu.matmul %38, %40, %cst_18 {dimension_numbers = #tpu.dot_dimension_numbers<[1], [0], [0], [1], [0, 0, 1, 1], [], []>} : vector<16x32xbf16>, vector<32x96xbf16>, vector<16x96xf32> -> vector<16x96xf32>
    %42 = vector.broadcast %11 : vector<1x96xf32> to vector<16x96xf32>
    %43 = arith.addf %41, %42 : vector<16x96xf32>
    %44 = vector.extract_strided_slice %43 {offsets = [0, 0], sizes = [16, 16], strides = [1, 1]} : vector<16x96xf32> to vector<16x16xf32>
    %45 = arith.truncf %44 : vector<16x16xf32> to vector<16x16xbf16>
    %46 = vector.extract_strided_slice %43 {offsets = [0, 32], sizes = [16, 16], strides = [1, 1]} : vector<16x96xf32> to vector<16x16xf32>
    %47 = arith.truncf %46 : vector<16x16xf32> to vector<16x16xbf16>
    %48 = vector.extract_strided_slice %43 {offsets = [0, 64], sizes = [16, 16], strides = [1, 1]} : vector<16x96xf32> to vector<16x16xf32>
    %49 = arith.truncf %48 : vector<16x16xf32> to vector<16x16xbf16>
    %cst_19 = arith.constant dense<0.000000e+00> : vector<16x16xf32>
    %50 = tpu.matmul %45, %47, %cst_19 {dimension_numbers = #tpu.dot_dimension_numbers<[1], [1], [0], [0], [0, 0, 1, 0], [], []>} : vector<16x16xbf16>, vector<16x16xbf16>, vector<16x16xf32> -> vector<16x16xf32>
    %51 = arith.addf %50, %6 : vector<16x16xf32>
    %cst_20 = arith.constant dense<0xFF800000> : vector<16xf32>
    %52 = vector.multi_reduction <maximumf>, %51, %cst_20 [1] : vector<16x16xf32> to vector<16xf32>
    %53 = vector.shape_cast %52 : vector<16xf32> to vector<16x1xf32>
    %54 = vector.broadcast %53 : vector<16x1xf32> to vector<16x16xf32>
    %55 = arith.subf %51, %54 : vector<16x16xf32>
    %56 = math.exp %55 : vector<16x16xf32>
    %cst_21 = arith.constant dense<0.000000e+00> : vector<16xf32>
    %57 = vector.multi_reduction <add>, %56, %cst_21 [1] : vector<16x16xf32> to vector<16xf32>
    %58 = vector.shape_cast %57 : vector<16xf32> to vector<16x1xf32>
    %59 = vector.broadcast %58 : vector<16x1xf32> to vector<16x16xf32>
    %60 = arith.divf %56, %59 : vector<16x16xf32>
    %61 = arith.truncf %60 : vector<16x16xf32> to vector<16x16xbf16>
    %cst_22 = arith.constant dense<0.000000e+00> : vector<16x16xf32>
    %62 = tpu.matmul %61, %49, %cst_22 {dimension_numbers = #tpu.dot_dimension_numbers<[1], [0], [0], [1], [0, 0, 1, 1], [], []>} : vector<16x16xbf16>, vector<16x16xbf16>, vector<16x16xf32> -> vector<16x16xf32>
    %63 = vector.extract_strided_slice %43 {offsets = [0, 16], sizes = [16, 16], strides = [1, 1]} : vector<16x96xf32> to vector<16x16xf32>
    %64 = arith.truncf %63 : vector<16x16xf32> to vector<16x16xbf16>
    %65 = vector.extract_strided_slice %43 {offsets = [0, 48], sizes = [16, 16], strides = [1, 1]} : vector<16x96xf32> to vector<16x16xf32>
    %66 = arith.truncf %65 : vector<16x16xf32> to vector<16x16xbf16>
    %67 = vector.extract_strided_slice %43 {offsets = [0, 80], sizes = [16, 16], strides = [1, 1]} : vector<16x96xf32> to vector<16x16xf32>
    %68 = arith.truncf %67 : vector<16x16xf32> to vector<16x16xbf16>
    %cst_23 = arith.constant dense<0.000000e+00> : vector<16x16xf32>
    %69 = tpu.matmul %64, %66, %cst_23 {dimension_numbers = #tpu.dot_dimension_numbers<[1], [1], [0], [0], [0, 0, 1, 0], [], []>} : vector<16x16xbf16>, vector<16x16xbf16>, vector<16x16xf32> -> vector<16x16xf32>
    %70 = arith.addf %69, %6 : vector<16x16xf32>
    %cst_24 = arith.constant dense<0xFF800000> : vector<16xf32>
    %71 = vector.multi_reduction <maximumf>, %70, %cst_24 [1] : vector<16x16xf32> to vector<16xf32>
    %72 = vector.shape_cast %71 : vector<16xf32> to vector<16x1xf32>
    %73 = vector.broadcast %72 : vector<16x1xf32> to vector<16x16xf32>
    %74 = arith.subf %70, %73 : vector<16x16xf32>
    %75 = math.exp %74 : vector<16x16xf32>
    %cst_25 = arith.constant dense<0.000000e+00> : vector<16xf32>
    %76 = vector.multi_reduction <add>, %75, %cst_25 [1] : vector<16x16xf32> to vector<16xf32>
    %77 = vector.shape_cast %76 : vector<16xf32> to vector<16x1xf32>
    %78 = vector.broadcast %77 : vector<16x1xf32> to vector<16x16xf32>
    %79 = arith.divf %75, %78 : vector<16x16xf32>
    %80 = arith.truncf %79 : vector<16x16xf32> to vector<16x16xbf16>
    %cst_26 = arith.constant dense<0.000000e+00> : vector<16x16xf32>
    %81 = tpu.matmul %80, %68, %cst_26 {dimension_numbers = #tpu.dot_dimension_numbers<[1], [0], [0], [1], [0, 0, 1, 1], [], []>} : vector<16x16xbf16>, vector<16x16xbf16>, vector<16x16xf32> -> vector<16x16xf32>
    %82 = tpu.concatenate %62, %81 in 1 : vector<16x16xf32>, vector<16x16xf32> -> vector<16x32xf32>
    %83 = arith.truncf %82 : vector<16x32xf32> to vector<16x32xbf16>
    %c0_27 = arith.constant 0 : index
    %c0_28 = arith.constant 0 : index
    %c0_29 = arith.constant 0 : index
    %84 = vector.load %arg7[%c0_27, %c0_28, %c0_29] : memref<2x32x32xbf16, #tpu.memory_space<vmem>>, vector<1x32x32xbf16>
    %85 = vector.shape_cast %84 : vector<1x32x32xbf16> to vector<32x32xbf16>
    %cst_30 = arith.constant dense<0.000000e+00> : vector<16x32xf32>
    %86 = tpu.matmul %83, %85, %cst_30 {dimension_numbers = #tpu.dot_dimension_numbers<[1], [0], [0], [1], [0, 0, 1, 1], [], []>} : vector<16x32xbf16>, vector<32x32xbf16>, vector<16x32xf32> -> vector<16x32xf32>
    %87 = vector.broadcast %12 : vector<1x32xf32> to vector<16x32xf32>
    %88 = arith.addf %86, %87 : vector<16x32xf32>
    %89 = arith.addf %5, %88 : vector<16x32xf32>
    %cst_31 = arith.constant dense<0.000000e+00> : vector<16xf32>
    %90 = vector.multi_reduction <add>, %89, %cst_31 [1] : vector<16x32xf32> to vector<16xf32>
    %91 = vector.shape_cast %90 : vector<16xf32> to vector<16x1xf32>
    %cst_32 = arith.constant 3.200000e+01 : f32
    %92 = vector.broadcast %cst_32 : f32 to vector<16x1xf32>
    %93 = arith.divf %91, %92 : vector<16x1xf32>
    %94 = vector.broadcast %93 : vector<16x1xf32> to vector<16x32xf32>
    %95 = arith.subf %89, %94 : vector<16x32xf32>
    %96 = arith.mulf %95, %95 : vector<16x32xf32>
    %cst_33 = arith.constant dense<0.000000e+00> : vector<16xf32>
    %97 = vector.multi_reduction <add>, %96, %cst_33 [1] : vector<16x32xf32> to vector<16xf32>
    %98 = vector.shape_cast %97 : vector<16xf32> to vector<16x1xf32>
    %cst_34 = arith.constant 3.200000e+01 : f32
    %99 = vector.broadcast %cst_34 : f32 to vector<16x1xf32>
    %100 = arith.divf %98, %99 : vector<16x1xf32>
    %101 = vector.broadcast %93 : vector<16x1xf32> to vector<16x32xf32>
    %102 = arith.subf %89, %101 : vector<16x32xf32>
    %cst_35 = arith.constant 9.99999974E-6 : f32
    %103 = vector.broadcast %cst_35 : f32 to vector<16x1xf32>
    %104 = arith.addf %100, %103 : vector<16x1xf32>
    %105 = math.rsqrt %104 : vector<16x1xf32>
    %106 = vector.broadcast %105 : vector<16x1xf32> to vector<16x32xf32>
    %107 = arith.mulf %102, %106 : vector<16x32xf32>
    %108 = vector.broadcast %13 : vector<1x32xf32> to vector<16x32xf32>
    %109 = arith.mulf %107, %108 : vector<16x32xf32>
    %110 = vector.broadcast %14 : vector<1x32xf32> to vector<16x32xf32>
    %111 = arith.addf %109, %110 : vector<16x32xf32>
    %112 = arith.truncf %111 : vector<16x32xf32> to vector<16x32xbf16>
    %c0_36 = arith.constant 0 : index
    %c0_37 = arith.constant 0 : index
    %c0_38 = arith.constant 0 : index
    %113 = vector.load %arg8[%c0_36, %c0_37, %c0_38] : memref<2x32x32xbf16, #tpu.memory_space<vmem>>, vector<1x32x32xbf16>
    %114 = vector.shape_cast %113 : vector<1x32x32xbf16> to vector<32x32xbf16>
    %cst_39 = arith.constant dense<0.000000e+00> : vector<16x32xf32>
    %115 = tpu.matmul %112, %114, %cst_39 {dimension_numbers = #tpu.dot_dimension_numbers<[1], [0], [0], [1], [0, 0, 1, 1], [], []>} : vector<16x32xbf16>, vector<32x32xbf16>, vector<16x32xf32> -> vector<16x32xf32>
    %116 = vector.broadcast %15 : vector<1x32xf32> to vector<16x32xf32>
    %117 = arith.addf %115, %116 : vector<16x32xf32>
    %118 = arith.addf %89, %117 : vector<16x32xf32>
    %c1 = arith.constant 1 : index
    %c0_40 = arith.constant 0 : index
    %c0_41 = arith.constant 0 : index
    %119 = vector.load %arg5[%c1, %c0_40, %c0_41] : memref<2x7x96xf32, #tpu.memory_space<vmem>>, vector<1x7x96xf32>
    %120 = vector.shape_cast %119 : vector<1x7x96xf32> to vector<7x96xf32>
    %121 = vector.extract_strided_slice %120 {offsets = [0, 0], sizes = [1, 32], strides = [1, 1]} : vector<7x96xf32> to vector<1x32xf32>
    %122 = vector.extract_strided_slice %120 {offsets = [1, 0], sizes = [1, 32], strides = [1, 1]} : vector<7x96xf32> to vector<1x32xf32>
    %123 = vector.extract_strided_slice %120 {offsets = [2, 0], sizes = [1, 96], strides = [1, 1]} : vector<7x96xf32> to vector<1x96xf32>
    %124 = vector.extract_strided_slice %120 {offsets = [3, 0], sizes = [1, 32], strides = [1, 1]} : vector<7x96xf32> to vector<1x32xf32>
    %125 = vector.extract_strided_slice %120 {offsets = [4, 0], sizes = [1, 32], strides = [1, 1]} : vector<7x96xf32> to vector<1x32xf32>
    %126 = vector.extract_strided_slice %120 {offsets = [5, 0], sizes = [1, 32], strides = [1, 1]} : vector<7x96xf32> to vector<1x32xf32>
    %127 = vector.extract_strided_slice %120 {offsets = [6, 0], sizes = [1, 32], strides = [1, 1]} : vector<7x96xf32> to vector<1x32xf32>
    %cst_42 = arith.constant dense<0.000000e+00> : vector<16xf32>
    %128 = vector.multi_reduction <add>, %118, %cst_42 [1] : vector<16x32xf32> to vector<16xf32>
    %129 = vector.shape_cast %128 : vector<16xf32> to vector<16x1xf32>
    %cst_43 = arith.constant 3.200000e+01 : f32
    %130 = vector.broadcast %cst_43 : f32 to vector<16x1xf32>
    %131 = arith.divf %129, %130 : vector<16x1xf32>
    %132 = vector.broadcast %131 : vector<16x1xf32> to vector<16x32xf32>
    %133 = arith.subf %118, %132 : vector<16x32xf32>
    %134 = arith.mulf %133, %133 : vector<16x32xf32>
    %cst_44 = arith.constant dense<0.000000e+00> : vector<16xf32>
    %135 = vector.multi_reduction <add>, %134, %cst_44 [1] : vector<16x32xf32> to vector<16xf32>
    %136 = vector.shape_cast %135 : vector<16xf32> to vector<16x1xf32>
    %cst_45 = arith.constant 3.200000e+01 : f32
    %137 = vector.broadcast %cst_45 : f32 to vector<16x1xf32>
    %138 = arith.divf %136, %137 : vector<16x1xf32>
    %139 = vector.broadcast %131 : vector<16x1xf32> to vector<16x32xf32>
    %140 = arith.subf %118, %139 : vector<16x32xf32>
    %cst_46 = arith.constant 9.99999974E-6 : f32
    %141 = vector.broadcast %cst_46 : f32 to vector<16x1xf32>
    %142 = arith.addf %138, %141 : vector<16x1xf32>
    %143 = math.rsqrt %142 : vector<16x1xf32>
    %144 = vector.broadcast %143 : vector<16x1xf32> to vector<16x32xf32>
    %145 = arith.mulf %140, %144 : vector<16x32xf32>
    %146 = vector.broadcast %121 : vector<1x32xf32> to vector<16x32xf32>
    %147 = arith.mulf %145, %146 : vector<16x32xf32>
    %148 = vector.broadcast %122 : vector<1x32xf32> to vector<16x32xf32>
    %149 = arith.addf %147, %148 : vector<16x32xf32>
    %150 = arith.truncf %149 : vector<16x32xf32> to vector<16x32xbf16>
    %c1_47 = arith.constant 1 : index
    %c0_48 = arith.constant 0 : index
    %c0_49 = arith.constant 0 : index
    %151 = vector.load %arg6[%c1_47, %c0_48, %c0_49] : memref<2x32x96xbf16, #tpu.memory_space<vmem>>, vector<1x32x96xbf16>
    %152 = vector.shape_cast %151 : vector<1x32x96xbf16> to vector<32x96xbf16>
    %cst_50 = arith.constant dense<0.000000e+00> : vector<16x96xf32>
    %153 = tpu.matmul %150, %152, %cst_50 {dimension_numbers = #tpu.dot_dimension_numbers<[1], [0], [0], [1], [0, 0, 1, 1], [], []>} : vector<16x32xbf16>, vector<32x96xbf16>, vector<16x96xf32> -> vector<16x96xf32>
    %154 = vector.broadcast %123 : vector<1x96xf32> to vector<16x96xf32>
    %155 = arith.addf %153, %154 : vector<16x96xf32>
    %156 = vector.extract_strided_slice %155 {offsets = [0, 0], sizes = [16, 16], strides = [1, 1]} : vector<16x96xf32> to vector<16x16xf32>
    %157 = arith.truncf %156 : vector<16x16xf32> to vector<16x16xbf16>
    %158 = vector.extract_strided_slice %155 {offsets = [0, 32], sizes = [16, 16], strides = [1, 1]} : vector<16x96xf32> to vector<16x16xf32>
    %159 = arith.truncf %158 : vector<16x16xf32> to vector<16x16xbf16>
    %160 = vector.extract_strided_slice %155 {offsets = [0, 64], sizes = [16, 16], strides = [1, 1]} : vector<16x96xf32> to vector<16x16xf32>
    %161 = arith.truncf %160 : vector<16x16xf32> to vector<16x16xbf16>
    %cst_51 = arith.constant dense<0.000000e+00> : vector<16x16xf32>
    %162 = tpu.matmul %157, %159, %cst_51 {dimension_numbers = #tpu.dot_dimension_numbers<[1], [1], [0], [0], [0, 0, 1, 0], [], []>} : vector<16x16xbf16>, vector<16x16xbf16>, vector<16x16xf32> -> vector<16x16xf32>
    %163 = arith.addf %162, %6 : vector<16x16xf32>
    %cst_52 = arith.constant dense<0xFF800000> : vector<16xf32>
    %164 = vector.multi_reduction <maximumf>, %163, %cst_52 [1] : vector<16x16xf32> to vector<16xf32>
    %165 = vector.shape_cast %164 : vector<16xf32> to vector<16x1xf32>
    %166 = vector.broadcast %165 : vector<16x1xf32> to vector<16x16xf32>
    %167 = arith.subf %163, %166 : vector<16x16xf32>
    %168 = math.exp %167 : vector<16x16xf32>
    %cst_53 = arith.constant dense<0.000000e+00> : vector<16xf32>
    %169 = vector.multi_reduction <add>, %168, %cst_53 [1] : vector<16x16xf32> to vector<16xf32>
    %170 = vector.shape_cast %169 : vector<16xf32> to vector<16x1xf32>
    %171 = vector.broadcast %170 : vector<16x1xf32> to vector<16x16xf32>
    %172 = arith.divf %168, %171 : vector<16x16xf32>
    %173 = arith.truncf %172 : vector<16x16xf32> to vector<16x16xbf16>
    %cst_54 = arith.constant dense<0.000000e+00> : vector<16x16xf32>
    %174 = tpu.matmul %173, %161, %cst_54 {dimension_numbers = #tpu.dot_dimension_numbers<[1], [0], [0], [1], [0, 0, 1, 1], [], []>} : vector<16x16xbf16>, vector<16x16xbf16>, vector<16x16xf32> -> vector<16x16xf32>
    %175 = vector.extract_strided_slice %155 {offsets = [0, 16], sizes = [16, 16], strides = [1, 1]} : vector<16x96xf32> to vector<16x16xf32>
    %176 = arith.truncf %175 : vector<16x16xf32> to vector<16x16xbf16>
    %177 = vector.extract_strided_slice %155 {offsets = [0, 48], sizes = [16, 16], strides = [1, 1]} : vector<16x96xf32> to vector<16x16xf32>
    %178 = arith.truncf %177 : vector<16x16xf32> to vector<16x16xbf16>
    %179 = vector.extract_strided_slice %155 {offsets = [0, 80], sizes = [16, 16], strides = [1, 1]} : vector<16x96xf32> to vector<16x16xf32>
    %180 = arith.truncf %179 : vector<16x16xf32> to vector<16x16xbf16>
    %cst_55 = arith.constant dense<0.000000e+00> : vector<16x16xf32>
    %181 = tpu.matmul %176, %178, %cst_55 {dimension_numbers = #tpu.dot_dimension_numbers<[1], [1], [0], [0], [0, 0, 1, 0], [], []>} : vector<16x16xbf16>, vector<16x16xbf16>, vector<16x16xf32> -> vector<16x16xf32>
    %182 = arith.addf %181, %6 : vector<16x16xf32>
    %cst_56 = arith.constant dense<0xFF800000> : vector<16xf32>
    %183 = vector.multi_reduction <maximumf>, %182, %cst_56 [1] : vector<16x16xf32> to vector<16xf32>
    %184 = vector.shape_cast %183 : vector<16xf32> to vector<16x1xf32>
    %185 = vector.broadcast %184 : vector<16x1xf32> to vector<16x16xf32>
    %186 = arith.subf %182, %185 : vector<16x16xf32>
    %187 = math.exp %186 : vector<16x16xf32>
    %cst_57 = arith.constant dense<0.000000e+00> : vector<16xf32>
    %188 = vector.multi_reduction <add>, %187, %cst_57 [1] : vector<16x16xf32> to vector<16xf32>
    %189 = vector.shape_cast %188 : vector<16xf32> to vector<16x1xf32>
    %190 = vector.broadcast %189 : vector<16x1xf32> to vector<16x16xf32>
    %191 = arith.divf %187, %190 : vector<16x16xf32>
    %192 = arith.truncf %191 : vector<16x16xf32> to vector<16x16xbf16>
    %cst_58 = arith.constant dense<0.000000e+00> : vector<16x16xf32>
    %193 = tpu.matmul %192, %180, %cst_58 {dimension_numbers = #tpu.dot_dimension_numbers<[1], [0], [0], [1], [0, 0, 1, 1], [], []>} : vector<16x16xbf16>, vector<16x16xbf16>, vector<16x16xf32> -> vector<16x16xf32>
    %194 = tpu.concatenate %174, %193 in 1 : vector<16x16xf32>, vector<16x16xf32> -> vector<16x32xf32>
    %195 = arith.truncf %194 : vector<16x32xf32> to vector<16x32xbf16>
    %c1_59 = arith.constant 1 : index
    %c0_60 = arith.constant 0 : index
    %c0_61 = arith.constant 0 : index
    %196 = vector.load %arg7[%c1_59, %c0_60, %c0_61] : memref<2x32x32xbf16, #tpu.memory_space<vmem>>, vector<1x32x32xbf16>
    %197 = vector.shape_cast %196 : vector<1x32x32xbf16> to vector<32x32xbf16>
    %cst_62 = arith.constant dense<0.000000e+00> : vector<16x32xf32>
    %198 = tpu.matmul %195, %197, %cst_62 {dimension_numbers = #tpu.dot_dimension_numbers<[1], [0], [0], [1], [0, 0, 1, 1], [], []>} : vector<16x32xbf16>, vector<32x32xbf16>, vector<16x32xf32> -> vector<16x32xf32>
    %199 = vector.broadcast %124 : vector<1x32xf32> to vector<16x32xf32>
    %200 = arith.addf %198, %199 : vector<16x32xf32>
    %201 = arith.addf %118, %200 : vector<16x32xf32>
    %cst_63 = arith.constant dense<0.000000e+00> : vector<16xf32>
    %202 = vector.multi_reduction <add>, %201, %cst_63 [1] : vector<16x32xf32> to vector<16xf32>
    %203 = vector.shape_cast %202 : vector<16xf32> to vector<16x1xf32>
    %cst_64 = arith.constant 3.200000e+01 : f32
    %204 = vector.broadcast %cst_64 : f32 to vector<16x1xf32>
    %205 = arith.divf %203, %204 : vector<16x1xf32>
    %206 = vector.broadcast %205 : vector<16x1xf32> to vector<16x32xf32>
    %207 = arith.subf %201, %206 : vector<16x32xf32>
    %208 = arith.mulf %207, %207 : vector<16x32xf32>
    %cst_65 = arith.constant dense<0.000000e+00> : vector<16xf32>
    %209 = vector.multi_reduction <add>, %208, %cst_65 [1] : vector<16x32xf32> to vector<16xf32>
    %210 = vector.shape_cast %209 : vector<16xf32> to vector<16x1xf32>
    %cst_66 = arith.constant 3.200000e+01 : f32
    %211 = vector.broadcast %cst_66 : f32 to vector<16x1xf32>
    %212 = arith.divf %210, %211 : vector<16x1xf32>
    %213 = vector.broadcast %205 : vector<16x1xf32> to vector<16x32xf32>
    %214 = arith.subf %201, %213 : vector<16x32xf32>
    %cst_67 = arith.constant 9.99999974E-6 : f32
    %215 = vector.broadcast %cst_67 : f32 to vector<16x1xf32>
    %216 = arith.addf %212, %215 : vector<16x1xf32>
    %217 = math.rsqrt %216 : vector<16x1xf32>
    %218 = vector.broadcast %217 : vector<16x1xf32> to vector<16x32xf32>
    %219 = arith.mulf %214, %218 : vector<16x32xf32>
    %220 = vector.broadcast %125 : vector<1x32xf32> to vector<16x32xf32>
    %221 = arith.mulf %219, %220 : vector<16x32xf32>
    %222 = vector.broadcast %126 : vector<1x32xf32> to vector<16x32xf32>
    %223 = arith.addf %221, %222 : vector<16x32xf32>
    %224 = arith.truncf %223 : vector<16x32xf32> to vector<16x32xbf16>
    %c1_68 = arith.constant 1 : index
    %c0_69 = arith.constant 0 : index
    %c0_70 = arith.constant 0 : index
    %225 = vector.load %arg8[%c1_68, %c0_69, %c0_70] : memref<2x32x32xbf16, #tpu.memory_space<vmem>>, vector<1x32x32xbf16>
    %226 = vector.shape_cast %225 : vector<1x32x32xbf16> to vector<32x32xbf16>
    %cst_71 = arith.constant dense<0.000000e+00> : vector<16x32xf32>
    %227 = tpu.matmul %224, %226, %cst_71 {dimension_numbers = #tpu.dot_dimension_numbers<[1], [0], [0], [1], [0, 0, 1, 1], [], []>} : vector<16x32xbf16>, vector<32x32xbf16>, vector<16x32xf32> -> vector<16x32xf32>
    %228 = vector.broadcast %127 : vector<1x32xf32> to vector<16x32xf32>
    %229 = arith.addf %227, %228 : vector<16x32xf32>
    %230 = arith.addf %201, %229 : vector<16x32xf32>
    %231 = arith.truncf %230 : vector<16x32xf32> to vector<16x32xbf16>
    %c0_72 = arith.constant 0 : index
    %c0_73 = arith.constant 0 : index
    %232 = vector.load %arg9[%c0_72, %c0_73] : memref<32x128xbf16, #tpu.memory_space<vmem>>, vector<32x128xbf16>
    %cst_74 = arith.constant dense<0.000000e+00> : vector<16x128xf32>
    %233 = tpu.matmul %231, %232, %cst_74 {dimension_numbers = #tpu.dot_dimension_numbers<[1], [0], [0], [1], [0, 0, 1, 1], [], []>} : vector<16x32xbf16>, vector<32x128xbf16>, vector<16x128xf32> -> vector<16x128xf32>
    %c0_75 = arith.constant 0 : index
    %c0_76 = arith.constant 0 : index
    %234 = vector.load %arg10[%c0_75, %c0_76] : memref<1x128xf32, #tpu.memory_space<vmem>>, vector<1x128xf32>
    %235 = vector.broadcast %234 : vector<1x128xf32> to vector<16x128xf32>
    %236 = arith.addf %233, %235 : vector<16x128xf32>
    %c0_77 = arith.constant 0 : index
    %c0_78 = arith.constant 0 : index
    %237 = vector.load %arg11[%c0_77, %c0_78] : memref<16x128xf32, #tpu.memory_space<vmem>>, vector<16x128xf32>
    tpu.vector_store %arg11[%c0_77, %c0_78], %236 {strides = array<i32>} : memref<16x128xf32, #tpu.memory_space<vmem>>, vector<16x128xf32>,
    return
  }
  func.func @transform_0(%arg0: i32) -> (i32, i32) {
    %c0_i32 = arith.constant 0 : i32
    %c0_i32_0 = arith.constant 0 : i32
    return %arg0, %c0_i32 : i32, i32
  }
  func.func @transform_1(%arg0: i32) -> (i32, i32) {
    %c0_i32 = arith.constant 0 : i32
    %c0_i32_0 = arith.constant 0 : i32
    %c0_i32_1 = arith.constant 0 : i32
    return %c0_i32, %c0_i32_0 : i32, i32
  }
  func.func @transform_2(%arg0: i32) -> (i32, i32) {
    %c0_i32 = arith.constant 0 : i32
    %c0_i32_0 = arith.constant 0 : i32
    %c0_i32_1 = arith.constant 0 : i32
    return %c0_i32, %c0_i32_0 : i32, i32
  }
  func.func @transform_3(%arg0: i32) -> (i32, i32) {
    %c0_i32 = arith.constant 0 : i32
    %c0_i32_0 = arith.constant 0 : i32
    %c0_i32_1 = arith.constant 0 : i32
    return %c0_i32, %c0_i32_0 : i32, i32
  }
  func.func @transform_4(%arg0: i32) -> (i32, i32, i32) {
    %c0_i32 = arith.constant 0 : i32
    %c0_i32_0 = arith.constant 0 : i32
    %c0_i32_1 = arith.constant 0 : i32
    %c0_i32_2 = arith.constant 0 : i32
    return %c0_i32, %c0_i32_0, %c0_i32_1 : i32, i32, i32
  }
  func.func @transform_5(%arg0: i32) -> (i32, i32, i32) {
    %c0_i32 = arith.constant 0 : i32
    %c0_i32_0 = arith.constant 0 : i32
    %c0_i32_1 = arith.constant 0 : i32
    %c0_i32_2 = arith.constant 0 : i32
    return %c0_i32, %c0_i32_0, %c0_i32_1 : i32, i32, i32
  }
  func.func @transform_6(%arg0: i32) -> (i32, i32, i32) {
    %c0_i32 = arith.constant 0 : i32
    %c0_i32_0 = arith.constant 0 : i32
    %c0_i32_1 = arith.constant 0 : i32
    %c0_i32_2 = arith.constant 0 : i32
    return %c0_i32, %c0_i32_0, %c0_i32_1 : i32, i32, i32
  }
  func.func @transform_7(%arg0: i32) -> (i32, i32, i32) {
    %c0_i32 = arith.constant 0 : i32
    %c0_i32_0 = arith.constant 0 : i32
    %c0_i32_1 = arith.constant 0 : i32
    %c0_i32_2 = arith.constant 0 : i32
    return %c0_i32, %c0_i32_0, %c0_i32_1 : i32, i32, i32
  }
  func.func @transform_8(%arg0: i32) -> (i32, i32) {
    %c0_i32 = arith.constant 0 : i32
    %c0_i32_0 = arith.constant 0 : i32
    %c0_i32_1 = arith.constant 0 : i32
    return %c0_i32, %c0_i32_0 : i32, i32
  }
  func.func @transform_9(%arg0: i32) -> (i32, i32) {
    %c0_i32 = arith.constant 0 : i32
    %c0_i32_0 = arith.constant 0 : i32
    %c0_i32_1 = arith.constant 0 : i32
    return %c0_i32, %c0_i32_0 : i32, i32
  }
  func.func @transform_10(%arg0: i32) -> (i32, i32) {
    %c0_i32 = arith.constant 0 : i32
    %c0_i32_0 = arith.constant 0 : i32
    return %arg0, %c0_i32 : i32, i32
  }
}

</mosaic_0001>

<bundles_post_ra>
// kernel: tpu_custom_call.1
= control target key start
LH: loop header
LB: loop body
LE: loop exit
PB: predicated region body
PF: predicated region fallthrough
CT: control target
= control target key end

     0   :  { %15 = vsyncpa [#allocation3], 0  ;;  %s2217_s0 = inlined_call_operand.vmem [shape: f32[16,32], index: 0, kind: input, shape index: {}]   ;;  %s2218_s1 = inlined_call_operand.hbm [shape: f32[16,16], index: 1, kind: input, shape index: {}]   ;;  %s2219_s2 = inlined_call_operand.hbm [shape: bf16[32,32], index: 2, kind: input, shape index: {}]   ;;  %s2220_s3 = inlined_call_operand.hbm [shape: f32[16,32], index: 3, kind: input, shape index: {}]   ;;  %s2221_s4 = inlined_call_operand.vmem [shape: f32[2,7,96], index: 4, kind: input, shape index: {}]   ;;  %s2222_s5 = inlined_call_operand.vmem [shape: bf16[2,32,96], index: 5, kind: input, shape index: {}]   ;;  %s2223_s6 = inlined_call_operand.hbm [shape: bf16[2,32,32], index: 6, kind: input, shape index: {}]   ;;  %s2224_s7 = inlined_call_operand.hbm [shape: bf16[2,32,32], index: 7, kind: input, shape index: {}]   ;;  %s2225_s8 = inlined_call_operand.hbm [shape: bf16[32,128], index: 8, kind: input, shape index: {}]   ;;  %s2226_s9 = inlined_call_operand.vmem [shape: f32[1,128], index: 9, kind: input, shape index: {}]   ;;  %s2227_s10 = inlined_call_operand.hbm [shape: f32[16,128], index: 10, kind: output, shape index: {}]  }
   0x1   :  { %16 = vsyncpa [#allocation6], 0 }
   0x2   :  { %17 = vsyncpa [#allocation9], 0 }
   0x3   :  { %18 = vsyncpa [#allocation12], 0 }
   0x4   :  { %19 = vsyncpa [#allocation4], 0  ;;  %s1785_s13 = smov [#allocation5]   ;;  %s1621_s17 = scalar_lea.hbm %s2219_s2, 256 }
   0x5   :  { %s39_s14 = sshll.u32 %s1785_s13, 4  ;;  %p1622_p0 = scmp.ne.s32.totalorder %s2219_s2, %s1621_s17  ;;  %s40_s14 = int_to_ptr.vmem [resolvable:$true] %s39_s14 }
   0x6   :  { %p1625_p1 = scmp.lt.u32.totalorder %s1621_s17, %s2219_s2 }
   0x8   :  { %p1627_p2 = pnand %p1625_p1, %p1622_p0 }
   0xa   :  { %1630 = shalt.err (!%p1627_p2)
}
   0xb   :  { %s1631_s22 = scalar_lea.vmem %s40_s14, 256  ;;  %p1636_p4 = scmp.lt.s32.totalorder %s40_s14, %s40_s14 }
   0xc   :  { %p1632_p3 = scmp.ne.s32.totalorder %s40_s14, %s1631_s22  ;;  %p1637_p5 = scmp.lt.s32.totalorder %s1631_s22, %s1631_s22 }
   0xe   :  { %p1638_p6 = por %p1637_p5, %p1636_p4 }
  0x10   :  { %p1639_p7 = pnand %p1638_p6, %p1632_p3 }
  0x12   :  { %1642 = shalt.err (!%p1639_p7)
}
  0x13   :  { %s1786_s23 = smov 64   ;;  %s1787_s24 = smov 4  }
  0x14   :  { %45 = dma.hbm_to_vmem [thread:$0]  %s2219_s2, 256, %s40_s14, [#allocation6], %s1786_s23, %s1786_s23, %s1787_s24  }
  0x15   :  { %s1788_s27 = smov [#allocation8]   ;;  %s1789_s29 = smov [#allocation2]  }
  0x16   :  { %s67_s28 = sshll.u32 %s1788_s27, 4  ;;  %s27_s30 = sshll.u32 %s1789_s29, 4  ;;  %s68_s28 = int_to_ptr.vmem [resolvable:$true] %s67_s28  ;;  %s28_s30 = int_to_ptr.vmem [resolvable:$true] %s27_s30 }
  0x17   :  { %s1643_s13 = scalar_lea.hbm %s2223_s6, 512 }
  0x18   :  { %p1644_p8 = scmp.ne.s32.totalorder %s2223_s6, %s1643_s13  ;;  %p1647_p9 = scmp.lt.u32.totalorder %s1643_s13, %s2223_s6 }
  0x1a   :  { %p1649_p10 = pnand %p1647_p9, %p1644_p8 }
  0x1c   :  { %1652 = shalt.err (!%p1649_p10)
}
  0x1d   :  { %s1653_s2 = scalar_lea.vmem %s68_s28, 512  ;;  %p1658_p12 = scmp.lt.s32.totalorder %s68_s28, %s68_s28 }
  0x1e   :  { %p1654_p11 = scmp.ne.s32.totalorder %s68_s28, %s1653_s2  ;;  %p1659_p13 = scmp.lt.s32.totalorder %s1653_s2, %s1653_s2 }
  0x20   :  { %p1660_p0 = por %p1659_p13, %p1658_p12 }
  0x22   :  { %p1661_p1 = pnand %p1660_p0, %p1654_p11 }
  0x24   :  { %1664 = shalt.err (!%p1661_p1)
}
  0x25   :  { %73 = dma.hbm_to_vmem [thread:$0]  %s2223_s6, 512, %s68_s28, [#allocation9], %s1786_s23, %s1786_s23, %s1787_s24  }
  0x26   :  { %s1665_s22 = scalar_lea.hbm %s2218_s1, 256 }
  0x27   :  { %p1666_p2 = scmp.ne.s32.totalorder %s2218_s1, %s1665_s22  ;;  %p1669_p3 = scmp.lt.u32.totalorder %s1665_s22, %s2218_s1 }
  0x29   :  { %p1671_p4 = pnand %p1669_p3, %p1666_p2 }
  0x2b   :  { %1674 = shalt.err (!%p1671_p4)
}
  0x2c   :  { %s1675_s11 = scalar_lea.vmem %s28_s30, 256  ;;  %p1680_p6 = scmp.lt.s32.totalorder %s28_s30, %s28_s30 }
  0x2d   :  { %p1676_p5 = scmp.ne.s32.totalorder %s28_s30, %s1675_s11  ;;  %p1681_p7 = scmp.lt.s32.totalorder %s1675_s11, %s1675_s11 }
  0x2f   :  { %p1682_p8 = por %p1681_p7, %p1680_p6 }
  0x31   :  { %p1683_p9 = pnand %p1682_p8, %p1676_p5 }
  0x33   :  { %1686 = shalt.err (!%p1683_p9)
}
  0x34   :  { %s1790_s6 = smov 128   ;;  %s1791_s28 = smov 8  }
  0x35   :  { %33 = dma.hbm_to_vmem [thread:$0]  %s2218_s1, 256, %s28_s30, [#allocation3], %s1790_s6, %s1790_s6, %s1791_s28  }
  0x36   :  { %s1792_s15 = smov [#allocation7]   ;;  %s1793_s17 = smov [#allocation10]  }
  0x37   :  { %s51_s16 = sshll.u32 %s1792_s15, 4  ;;  %s79_s18 = sshll.u32 %s1793_s17, 4  ;;  %s52_s16 = int_to_ptr.vmem [resolvable:$true] %s51_s16  ;;  %s80_s18 = int_to_ptr.vmem [resolvable:$true] %s79_s18 }
  0x38   :  { %s1687_s19 = scalar_lea.hbm %s2220_s3, 256 }
  0x39   :  { %p1688_p10 = scmp.ne.s32.totalorder %s2220_s3, %s1687_s19  ;;  %p1691_p11 = scmp.lt.u32.totalorder %s1687_s19, %s2220_s3 }
  0x3b   :  { %p1693_p12 = pnand %p1691_p11, %p1688_p10 }
  0x3d   :  { %1696 = shalt.err (!%p1693_p12)
}
  0x3e   :  { %s1697_s1 = scalar_lea.vmem %s52_s16, 256  ;;  %p1702_p0 = scmp.lt.s32.totalorder %s52_s16, %s52_s16 }
  0x3f   :  { %p1698_p13 = scmp.ne.s32.totalorder %s52_s16, %s1697_s1  ;;  %p1703_p1 = scmp.lt.s32.totalorder %s1697_s1, %s1697_s1 }
  0x41   :  { %p1704_p2 = por %p1703_p1, %p1702_p0 }
  0x43   :  { %p1705_p3 = pnand %p1704_p2, %p1698_p13 }
  0x45   :  { %1708 = shalt.err (!%p1705_p3)
}
  0x46   :  { %57 = dma.hbm_to_vmem [thread:$0]  %s2220_s3, 256, %s52_s16, [#allocation6], %s1790_s6, %s1790_s6, %s1791_s28  }
  0x47   :  { %s1709_s11 = scalar_lea.hbm %s2224_s7, 512 }
  0x48   :  { %p1710_p4 = scmp.ne.s32.totalorder %s2224_s7, %s1709_s11  ;;  %p1713_p5 = scmp.lt.u32.totalorder %s1709_s11, %s2224_s7 }
  0x4a   :  { %p1715_p6 = pnand %p1713_p5, %p1710_p4 }
  0x4c   :  { %1718 = shalt.err (!%p1715_p6)
}
  0x4d   :  { %s1719_s2 = scalar_lea.vmem %s80_s18, 512  ;;  %p1724_p8 = scmp.lt.s32.totalorder %s80_s18, %s80_s18 }
  0x4e   :  { %p1720_p7 = scmp.ne.s32.totalorder %s80_s18, %s1719_s2  ;;  %p1725_p9 = scmp.lt.s32.totalorder %s1719_s2, %s1719_s2 }
  0x50   :  { %p1726_p10 = por %p1725_p9, %p1724_p8 }
  0x52   :  { %p1727_p11 = pnand %p1726_p10, %p1720_p7 }
  0x54   :  { %1730 = shalt.err (!%p1727_p11)
}
  0x55   :  { %85 = dma.hbm_to_vmem [thread:$0]  %s2224_s7, 512, %s80_s18, [#allocation9], %s1786_s23, %s1786_s23, %s1787_s24  }
  0x56   :  { %s1794_s14 = smov [#allocation11]   ;;  %s1731_s22 = scalar_lea.hbm %s2225_s8, 256 }
  0x57   :  { %s91_s19 = sshll.u32 %s1794_s14, 4  ;;  %p1732_p12 = scmp.ne.s32.totalorder %s2225_s8, %s1731_s22  ;;  %s92_s19 = int_to_ptr.vmem [resolvable:$true] %s91_s19 }
  0x58   :  { %p1735_p13 = scmp.lt.u32.totalorder %s1731_s22, %s2225_s8 }
  0x5a   :  { %p1737_p0 = pnand %p1735_p13, %p1732_p12 }
  0x5c   :  { %1740 = shalt.err (!%p1737_p0)
}
  0x5d   :  { %s1741_s27 = scalar_lea.vmem %s92_s19, 256  ;;  %p1746_p2 = scmp.lt.s32.totalorder %s92_s19, %s92_s19 }
  0x5e   :  { %p1742_p1 = scmp.ne.s32.totalorder %s92_s19, %s1741_s27  ;;  %p1747_p3 = scmp.lt.s32.totalorder %s1741_s27, %s1741_s27 }
  0x60   :  { %p1748_p4 = por %p1747_p3, %p1746_p2 }
  0x62   :  { %p1749_p5 = pnand %p1748_p4, %p1742_p1 }
  0x64   :  { %1752 = shalt.err (!%p1749_p5)
}
  0x65   :  { %97 = dma.hbm_to_vmem [thread:$0]  %s2225_s8, 256, %s92_s19, [#allocation12], %s1786_s23, %s1786_s23, %s1787_s24  }
  0x66   :  { %1775 = dma.done.wait [#allocation3], 256  }
  0x67   :  { %1776 = vsyncadd [#allocation3], 4294967040 }
  0x68   :  { %1777 = dma.done.wait [#allocation6], 512  }
  0x69   :  { %1778 = vsyncadd [#allocation6], 4294966784 }
  0x6a   :  { %1779 = dma.done.wait [#allocation9], 1024  }
  0x6b   :  { %1780 = vsyncadd [#allocation9], 4294966272 }
  0x6c   :  { %1781 = dma.done.wait [#allocation12], 256  }
  0x6d   :  { %1782 = vsyncadd [#allocation12], 4294967040  ;;  %v1795_v0 = vmov 0.0   ;;  %vm1796_vm0 = vmmov 0   ;;  %v1557_v1 = vld [vmem:[#allocation5] sm:$0xff]   ;;  %v1558_v2 = vld [vmem:[#allocation5 + $0x8] sm:$0xff]   ;;  %v215_v32 = vlaneseq }
  0x6e   :  { %1417 = vmatprep.subr.bf16.mxu0 %v1795_v0  ;;  %1421 = vmatprep.mubr.msk.bf16.mxu0 %vm1796_vm0, %v1795_v0  ;;  %v119_v3 = vld [vmem:[%s2217_s0] sm:$0xff]  ;;  %v120_v4 = vld [vmem:[%s2217_s0 + $0x8] sm:$0xff]  ;;  %vm140_vm1 = vcmask 261120   ;;  %s1797_s3 = smov 80   ;;  %s1798_s16 = smov 96   ;;  %vm296_vm2 = vcmask 130048  }
  0x6f   :  { %1425 = vmatprep.subr.bf16.mxu1 %v1795_v0  ;;  %1429 = vmatprep.mubr.msk.bf16.mxu1 %vm1796_vm0, %v1795_v0  ;;  %v121_v5 = vpack.c.bf16 %v120_v4, %v119_v3  ;;  %v126_v6 = vld [vmem:[#allocation7] sm:$0xff]  ;;  %v127_v8 = vld [vmem:[#allocation7 + $0x8] sm:$0xff]  ;;  %v1985_v35 = vshrl.u32 %v215_v32, 7  ;;  %s1799_s14 = smov 112   ;;  %s1800_s19 = smov 48  }
  0x70   :  { %1418 = vmatpush3.bf16.msra.mxu0 %v1557_v1  ;;  %v1559_v26 = vld [vmem:[%s2222_s5] sm:$0xff]   ;;  %v1560_v27 = vld [vmem:[%s2222_s5 + $0x8] sm:$0xff]   ;;  %s1801_s20 = smov 16  }
  0x71   :  { %1419 = vmatprep.subr.bf16.mxu0 %v1795_v0  ;;  %1426 = vmatpush3.bf16.msra.mxu1 %v1559_v26  ;;  %v217_v36 = vsub.s32 0, %v1985_v35  ;;  %v1991_v37 = vld [vmem:[%s2221_s4] sm:$0x7f]  ;;  %v223_v41 = vsub.s32 1, %v1985_v35  ;;  %v234_v50 = vsub.s32 2, %v1985_v35  ;;  %v2028_v3 = vld [vmem:[#allocation2 + $0x8] sm:$0xff] }
  0x72   :  { %1427 = vmatprep.subr.bf16.mxu1 %v1795_v0  ;;  %v2026_v1 = vld [vmem:[#allocation2] sm:$0xff] }
  0x73   :  { %v218_v40 = vrot.slane %v1991_v37, %v217_v36  ;;  %v224_v45 = vrot.slane %v1991_v37, %v223_v41  ;;  %v235_v51 = vrot.slane %v1991_v37, %v234_v50 }
  0x74   :  { %1420 = vmatpush3.bf16.msra.mxu0 %v1558_v2 }
  0x75   :  { %1433 = vmatprep.subr.bf16.mxu0 %v1795_v0  ;;  %1428 = vmatpush3.bf16.msra.mxu1 %v1560_v27 }
  0x76   :  { %1439 = vmatprep.subr.bf16.mxu1 %v1795_v0 }
  0x77   :  { %1422 = vmatmul.mubr.msk.bf16.vlgmr.msra.gmra.mrb[0].mxu0 %vm140_vm1, %v121_v5 }
  0x78   :  { %1435 = vmatprep.mubr.msk.bf16.mxu0 %vm1796_vm0, %v1795_v0 }
 0x14a   :  { %v178_v7 = vpop.f32.mrb[0].mxu0 }
 0x14b   :  { %v1965_v9 = vadd.f32 %v178_v7, %v126_v6  ;;  %v1423_v10 = vpop.f32.mrb[1].mxu0 }
 0x14c   :  { %v181_v11 = vpop.f32.mrb[2].mxu0 }
 0x14d   :  { %v1967_v12 = vadd.f32 %v181_v11, %v127_v8  ;;  %v1424_v13 = vpop.f32.mrb[3].mxu0  ;;  %v188_v14 = vsel %vm140_vm1, %v1965_v9, 0.0 }
 0x14e   :  { %189 = vadd.xlane.f32.xlu0 %v188_v14 }
 0x14f   :  { %v191_v15 = vsel %vm140_vm1, %v1967_v12, 0.0 }
 0x152   :  { %192 = vadd.xlane.f32.xlu0 %v191_v15 }
 0x1db   :  { %v190_v16 = vpop.xlane.xlu0 %189 }
 0x1dc   :  { %v195_v17 = vmul.f32 0.03125, %v190_v16 }
 0x1de   :  { %v197_v18 = vsub.f32 %v1965_v9, %v195_v17 }
 0x1df   :  { %v193_v19 = vpop.xlane.xlu0 %192 }
 0x1e0   :  { %v196_v20 = vmul.f32 0.03125, %v193_v19  ;;  %v199_v21 = vmul.f32 %v197_v18, %v197_v18 }
 0x1e2   :  { %v198_v22 = vsub.f32 %v1967_v12, %v196_v20  ;;  %v201_v23 = vsel %vm140_vm1, %v199_v21, 0.0 }
 0x1e3   :  { %202 = vadd.xlane.f32.xlu1 %v201_v23 }
 0x1e4   :  { %v200_v24 = vmul.f32 %v198_v22, %v198_v22 }
 0x1e6   :  { %v204_v25 = vsel %vm140_vm1, %v200_v24, 0.0 }
 0x1e7   :  { %205 = vadd.xlane.f32.xlu1 %v204_v25 }
 0x270   :  { %v203_v28 = vpop.xlane.xlu1 %202 }
 0x271   :  { %v207_v29 = vmul.f32 0.03125, %v203_v28 }
 0x273   :  { %v209_v30 = vadd.f32 1e-05, %v207_v29 }
 0x274   :  { %v206_v31 = vpop.xlane.xlu1 %205 }
 0x275   :  { %1573 = vrsqrt.f32 %v209_v30  ;;  %v208_v33 = vmul.f32 0.03125, %v206_v31 }
 0x277   :  { %v210_v34 = vadd.f32 1e-05, %v208_v33 }
 0x279   :  { %1575 = vrsqrt.f32 %v210_v34 }
 0x27f   :  { %v1574_v38 = vpop.eup %1573 }
 0x280   :  { %v213_v39 = vmul.f32 %v1574_v38, %v197_v18 }
 0x282   :  { %v219_v44 = vmul.f32 %v218_v40, %v213_v39 }
 0x283   :  { %v1576_v42 = vpop.eup %1575 }
 0x284   :  { %v214_v43 = vmul.f32 %v1576_v42, %v198_v22  ;;  %v225_v47 = vadd.f32 %v224_v45, %v219_v44 }
 0x286   :  { %v220_v46 = vmul.f32 %v218_v40, %v214_v43 }
 0x288   :  { %v226_v48 = vadd.f32 %v224_v45, %v220_v46 }
 0x28a   :  { %v227_v49 = vpack.c.bf16 %v226_v48, %v225_v47 }
 0x28c   :  { %1430 = vmatmul.mubr.msk.bf16.vlgmr.msra.gmra.mrb[0].mxu1 %vm140_vm1, %v227_v49 }
 0x28d   :  { %1441 = vmatprep.mubr.msk.bf16.mxu1 %vm1796_vm0, %v1795_v0 }
 0x35f   :  { %v285_v52 = vpop.f32.mrb[0].mxu1 }
 0x360   :  { %v1431_v53 = vpop.f32.mrb[1].mxu1  ;;  %v286_v55 = vadd.f32 %v285_v52, %v235_v51 }
 0x361   :  { %v288_v54 = vpop.f32.mrb[2].mxu1 }
 0x362   :  { %v289_v56 = vadd.f32 %v288_v54, %v235_v51  ;;  %v1432_v57 = vpop.f32.mrb[3].mxu1 }
 0x364   :  { %v2007_v58 = vpack.c.bf16 %v289_v56, %v286_v55 }
 0x366   :  { %416 = vrot.lane.b32.xlu1 %v2007_v58, %s1797_s3  ;;  %294 = vrot.lane.b32.xlu0 %v2007_v58, %s1798_s16 }
 0x36a   :  { %414 = vrot.lane.b32.xlu1 %v2007_v58, %s1799_s14 }
 0x3d8   :  { %v295_v59 = vpop.permute.xlu0 %294  ;;  %v417_v61 = vpop.permute.xlu1 %416 }
 0x3d9   :  { %v301_v60 = vsel %vm296_vm2, %v295_v59, 0  ;;  %v422_v62 = vsel %vm296_vm2, %v417_v61, 0 }
 0x3da   :  { %1434 = vmatpush3.bf16.xpose.msra.mxu0 %v301_v60 }
 0x3db   :  { %1445 = vmatprep.subr.bf16.mxu0 %v1795_v0 }
 0x3dc   :  { %v415_v63 = vpop.permute.xlu1 %414 }
 0x3e1   :  { %1436 = vmatmul.mubr.msk.bf16.vlgmr.msra.gmra.mrb[4].mxu0 %vm296_vm2, %v2007_v58 }
 0x3e2   :  { %1446 = vmatpush3.bf16.xpose.msra.mxu0 %v422_v62  ;;  %1447 = vmatprep.mubr.msk.bf16.mxu0 %vm1796_vm0, %v1795_v0  ;;  %v1561_v62 = vld [vmem:[#allocation8] sm:$0xff]  }
 0x3e3   :  { %1457 = vmatprep.subr.bf16.mxu0 %v1795_v0 }
 0x3e9   :  { %1448 = vmatmul.mubr.msk.bf16.vlgmr.msra.gmra.mrb[8].mxu0 %vm296_vm2, %v415_v63 }
 0x3ea   :  { %1461 = vmatprep.mubr.msk.bf16.mxu0 %vm1796_vm0, %v1795_v0  ;;  %1458 = vmatpush3.bf16.msra.mxu0 %v1561_v62 }
 0x3eb   :  { %1459 = vmatprep.subr.bf16.mxu0 %v1795_v0 }
 0x4b4   :  { %v337_v2 = vpop.f32.mrb[4].mxu0 }
 0x4b5   :  { %v338_v4 = vadd.f32 %v337_v2, %v2026_v1  ;;  %v1437_v5 = vpop.f32.mrb[5].mxu0 }
 0x4b6   :  { %v340_v6 = vpop.f32.mrb[6].mxu0 }
 0x4b7   :  { %v341_v7 = vadd.f32 %v340_v6, %v2028_v3  ;;  %v1438_v8 = vpop.f32.mrb[7].mxu0  ;;  %v344_v10 = vsel %vm296_vm2, %v338_v4, -inf  ;;  %v1562_v6 = vld [vmem:[#allocation8 + $0x8] sm:$0xff]  }
 0x4b8   :  { %345 = vmax.xlane.f32.xlu1 %v344_v10  ;;  %1460 = vmatpush3.bf16.msra.mxu0 %v1562_v6 }
 0x4b9   :  { %v347_v11 = vsel %vm296_vm2, %v341_v7, -inf  ;;  %1473 = vmatprep.subr.bf16.mxu0 %v1795_v0 }
 0x4ba   :  { %348 = vmax.xlane.f32.xlu0 %v347_v11 }
 0x4bc   :  { %v458_v13 = vpop.f32.mrb[8].mxu0 }
 0x4bd   :  { %v459_v14 = vadd.f32 %v458_v13, %v2026_v1  ;;  %v1449_v15 = vpop.f32.mrb[9].mxu0 }
 0x4be   :  { %v461_v16 = vpop.f32.mrb[10].mxu0 }
 0x4bf   :  { %v462_v17 = vadd.f32 %v461_v16, %v2028_v3  ;;  %v1450_v18 = vpop.f32.mrb[11].mxu0  ;;  %v465_v19 = vsel %vm296_vm2, %v459_v14, -inf }
 0x4c0   :  { %466 = vmax.xlane.f32.xlu0 %v465_v19 }
 0x4c1   :  { %v468_v20 = vsel %vm296_vm2, %v462_v17, -inf }
 0x4c4   :  { %469 = vmax.xlane.f32.xlu0 %v468_v20  ;;  %v552_v20 = vsub.s32 3, %v1985_v35 }
 0x545   :  { %v346_v21 = vpop.xlane.xlu1 %345 }
 0x546   :  { %v350_v22 = vsub.f32 %v338_v4, %v346_v21  ;;  %v553_v21 = vrot.slane %v1991_v37, %v552_v20 }
 0x547   :  { %v349_v23 = vpop.xlane.xlu0 %348 }
 0x548   :  { %v352_v24 = vmul.f32 1.442695, %v350_v22  ;;  %v351_v25 = vsub.f32 %v341_v7, %v349_v23 }
 0x54a   :  { %1577 = vpow2.f32 %v352_v24  ;;  %v354_v26 = vmul.f32 1.442695, %v351_v25 }
 0x54c   :  { %1579 = vpow2.f32 %v354_v26 }
 0x54d   :  { %v467_v27 = vpop.xlane.xlu0 %466 }
 0x54e   :  { %v471_v28 = vsub.f32 %v459_v14, %v467_v27 }
 0x550   :  { %v473_v29 = vmul.f32 1.442695, %v471_v28 }
 0x551   :  { %v470_v30 = vpop.xlane.xlu0 %469 }
 0x552   :  { %1581 = vpow2.f32 %v473_v29  ;;  %v472_v31 = vsub.f32 %v462_v17, %v470_v30 }
 0x554   :  { %v1578_v32 = vpop.eup %1577  ;;  %v475_v33 = vmul.f32 1.442695, %v472_v31 }
 0x555   :  { %v356_v34 = vsel %vm296_vm2, %v1578_v32, 0.0 }
 0x556   :  { %v1580_v38 = vpop.eup %1579  ;;  %1583 = vpow2.f32 %v475_v33  ;;  %357 = vadd.xlane.f32.xlu1 %v356_v34 }
 0x557   :  { %v359_v39 = vsel %vm296_vm2, %v1580_v38, 0.0 }
 0x558   :  { %360 = vadd.xlane.f32.xlu0 %v359_v39 }
 0x55c   :  { %v1582_v40 = vpop.eup %1581 }
 0x55d   :  { %v477_v42 = vsel %vm296_vm2, %v1582_v40, 0.0 }
 0x55e   :  { %478 = vadd.xlane.f32.xlu1 %v477_v42 }
 0x560   :  { %v1584_v43 = vpop.eup %1583 }
 0x561   :  { %v480_v44 = vsel %vm296_vm2, %v1584_v43, 0.0 }
 0x562   :  { %481 = vadd.xlane.f32.xlu0 %v480_v44 }
 0x56f   :  { %367 = vrot.lane.b32.xlu1 %v2007_v58, %s1786_s23 }
 0x578   :  { %488 = vrot.lane.b32.xlu0 %v2007_v58, %s1800_s19 }
 0x5e3   :  { %v358_v45 = vpop.xlane.xlu1 %357 }
 0x5e4   :  { %1585 = vrcp.f32 %v358_v45  ;;  %v1564_v45 = vld [vmem:[#allocation10 + $0x8] sm:$0xff]  }
 0x5e5   :  { %v361_v46 = vpop.xlane.xlu0 %360 }
 0x5e6   :  { %1587 = vrcp.f32 %v361_v46 }
 0x5eb   :  { %v479_v47 = vpop.xlane.xlu1 %478 }
 0x5ec   :  { %1589 = vrcp.f32 %v479_v47 }
 0x5ee   :  { %v1586_v48 = vpop.eup %1585 }
 0x5ef   :  { %v368_v49 = vpop.permute.xlu1 %367  ;;  %v482_v51 = vpop.xlane.xlu0 %481  ;;  %v363_v53 = vmul.f32 %v1586_v48, %v1578_v32 }
 0x5f0   :  { %v1588_v52 = vpop.eup %1587  ;;  %1591 = vrcp.f32 %v482_v51  ;;  %1440 = vmatpush3.bf16.msra.mxu1 %v368_v49 }
 0x5f1   :  { %v365_v54 = vmul.f32 %v1588_v52, %v1580_v38  ;;  %1451 = vmatprep.subr.bf16.mxu1 %v1795_v0 }
 0x5f3   :  { %v489_v55 = vpop.permute.xlu0 %488  ;;  %v366_v56 = vpack.c.bf16 %v365_v54, %v363_v53  ;;  %v640_v53 = vsub.s32 4, %v1985_v35 }
 0x5f5   :  { %1442 = vmatmul.mubr.msk.bf16.vlgmr.msra.gmra.mrb[4].mxu1 %vm296_vm2, %v366_v56  ;;  %v641_v54 = vrot.slane %v1991_v37, %v640_v53 }
 0x5f6   :  { %1452 = vmatpush3.bf16.msra.mxu1 %v489_v55  ;;  %1453 = vmatprep.mubr.msk.bf16.mxu1 %vm1796_vm0, %v1795_v0  ;;  %v1590_v57 = vpop.eup %1589  ;;  %v646_v55 = vsub.s32 5, %v1985_v35 }
 0x5f7   :  { %1465 = vmatprep.subr.bf16.mxu1 %v1795_v0  ;;  %v484_v59 = vmul.f32 %v1590_v57, %v1582_v40 }
 0x5fa   :  { %v1592_v58 = vpop.eup %1591 }
 0x5fb   :  { %v486_v60 = vmul.f32 %v1592_v58, %v1584_v43 }
 0x5fd   :  { %v487_v61 = vpack.c.bf16 %v486_v60, %v484_v59 }
 0x5ff   :  { %1454 = vmatmul.mubr.msk.bf16.vlgmr.msra.gmra.mrb[8].mxu1 %vm296_vm2, %v487_v61  ;;  %v647_v61 = vrot.slane %v1991_v37, %v646_v55 }
 0x600   :  { %1469 = vmatprep.mubr.msk.bf16.mxu1 %vm1796_vm0, %v1795_v0 }
 0x6c8   :  { %v407_v63 = vpop.f32.mrb[4].mxu1 }
 0x6c9   :  { %v1443_v2 = vpop.f32.mrb[5].mxu1 }
 0x6ca   :  { %v410_v4 = vpop.f32.mrb[6].mxu1 }
 0x6cb   :  { %v1444_v5 = vpop.f32.mrb[7].mxu1 }
 0x6cc   :  { %v657_v5 = vsub.s32 6, %v1985_v35 }
 0x6ce   :  { %v658_v6 = vrot.slane %v1991_v37, %v657_v5 }
 0x6d2   :  { %v528_v7 = vpop.f32.mrb[8].mxu1 }
 0x6d3   :  { %v1455_v8 = vpop.f32.mrb[9].mxu1 }
 0x6d4   :  { %v531_v10 = vpop.f32.mrb[10].mxu1 }
 0x6d5   :  { %v1547_v11 = vpack.i.bf16 %v531_v10, %v528_v7  ;;  %v1456_v13 = vpop.f32.mrb[11].mxu1 }
 0x6d7   :  { %1548 = vrot.lane.b32.xlu1 %v1547_v11, %s1801_s20 }
 0x749   :  { %v1549_v14 = vpop.permute.xlu1 %1548 }
 0x74a   :  { %v1551_v15 = vunpack.i.h.bf16 %v1549_v14  ;;  %v1550_v16 = vunpack.i.l.bf16 %v1549_v14 }
 0x74c   :  { %v544_v17 = vsel %vm296_vm2, %v410_v4, %v1551_v15  ;;  %v543_v18 = vsel %vm296_vm2, %v407_v63, %v1550_v16 }
 0x74d   :  { %v545_v19 = vpack.c.bf16 %v544_v17, %v543_v18 }
 0x74f   :  { %1462 = vmatmul.mubr.msk.bf16.vlgmr.msra.gmra.mrb[12].mxu0 %vm140_vm1, %v545_v19 }
 0x750   :  { %1477 = vmatprep.mubr.msk.bf16.mxu0 %vm1796_vm0, %v1795_v0 }
 0x822   :  { %v603_v22 = vpop.f32.mrb[12].mxu0 }
 0x823   :  { %v604_v23 = vadd.f32 %v603_v22, %v553_v21  ;;  %v1463_v24 = vpop.f32.mrb[13].mxu0 }
 0x824   :  { %v606_v25 = vpop.f32.mrb[14].mxu0 }
 0x825   :  { %v610_v26 = vadd.f32 %v604_v23, %v1965_v9  ;;  %v607_v27 = vadd.f32 %v606_v25, %v553_v21  ;;  %v1464_v28 = vpop.f32.mrb[15].mxu0 }
 0x827   :  { %v611_v29 = vadd.f32 %v607_v27, %v1967_v12  ;;  %v612_v30 = vsel %vm140_vm1, %v610_v26, 0.0  ;;  %v1563_v12 = vld [vmem:[#allocation10] sm:$0xff]  }
 0x828   :  { %613 = vadd.xlane.f32.xlu1 %v612_v30  ;;  %1466 = vmatpush3.bf16.msra.mxu1 %v1563_v12  ;;  %v1566_v30 = vld [vmem:[%s2222_s5 + $0x18] sm:$0xff]  }
 0x829   :  { %v615_v31 = vsel %vm140_vm1, %v611_v29, 0.0  ;;  %1467 = vmatprep.subr.bf16.mxu1 %v1795_v0 }
 0x82a   :  { %616 = vadd.xlane.f32.xlu0 %v615_v31 }
 0x82c   :  { %1468 = vmatpush3.bf16.msra.mxu1 %v1564_v45 }
 0x82d   :  { %1481 = vmatprep.subr.bf16.mxu1 %v1795_v0 }
 0x8b5   :  { %v614_v32 = vpop.xlane.xlu1 %613 }
 0x8b6   :  { %v618_v33 = vmul.f32 0.03125, %v614_v32 }
 0x8b7   :  { %v617_v34 = vpop.xlane.xlu0 %616 }
 0x8b8   :  { %v620_v38 = vsub.f32 %v610_v26, %v618_v33  ;;  %v619_v39 = vmul.f32 0.03125, %v617_v34 }
 0x8ba   :  { %v621_v40 = vsub.f32 %v611_v29, %v619_v39  ;;  %v622_v42 = vmul.f32 %v620_v38, %v620_v38 }
 0x8bc   :  { %v624_v43 = vsel %vm140_vm1, %v622_v42, 0.0  ;;  %v623_v9 = vmul.f32 %v621_v40, %v621_v40 }
 0x8bd   :  { %625 = vadd.xlane.f32.xlu0 %v624_v43 }
 0x8be   :  { %v627_v44 = vsel %vm140_vm1, %v623_v9, 0.0 }
 0x8bf   :  { %628 = vadd.xlane.f32.xlu1 %v627_v44 }
 0x94a   :  { %v626_v46 = vpop.xlane.xlu0 %625 }
 0x94b   :  { %v630_v47 = vmul.f32 0.03125, %v626_v46 }
 0x94c   :  { %v629_v48 = vpop.xlane.xlu1 %628 }
 0x94d   :  { %v632_v49 = vadd.f32 1e-05, %v630_v47  ;;  %v631_v51 = vmul.f32 0.03125, %v629_v48 }
 0x94f   :  { %1593 = vrsqrt.f32 %v632_v49  ;;  %v633_v52 = vadd.f32 1e-05, %v631_v51 }
 0x951   :  { %1595 = vrsqrt.f32 %v633_v52 }
 0x959   :  { %v1594_v56 = vpop.eup %1593 }
 0x95a   :  { %v636_v57 = vmul.f32 %v1594_v56, %v620_v38 }
 0x95b   :  { %v1596_v58 = vpop.eup %1595 }
 0x95c   :  { %v642_v59 = vmul.f32 %v641_v54, %v636_v57  ;;  %v637_v60 = vmul.f32 %v1596_v58, %v621_v40  ;;  %v2112_v40 = vld [vmem:[%s2221_s4 + $0x8] sm:$0x7f] }
 0x95d   :  { %v748_v42 = vrot.slane %v2112_v40, %v217_v36  ;;  %v754_v12 = vrot.slane %v2112_v40, %v223_v41  ;;  %v766_v36 = vrot.slane %v2112_v40, %v234_v50 }
 0x95e   :  { %v643_v62 = vmul.f32 %v641_v54, %v637_v60  ;;  %v648_v63 = vadd.f32 %v647_v61, %v642_v59 }
 0x960   :  { %v649_v2 = vadd.f32 %v647_v61, %v643_v62 }
 0x962   :  { %v650_v4 = vpack.c.bf16 %v649_v2, %v648_v63 }
 0x964   :  { %1470 = vmatmul.mubr.msk.bf16.vlgmr.msra.gmra.mrb[12].mxu1 %vm140_vm1, %v650_v4 }
 0x965   :  { %1483 = vmatprep.mubr.msk.bf16.mxu1 %vm1796_vm0, %v1795_v0 }
 0xa37   :  { %v708_v7 = vpop.f32.mrb[12].mxu1 }
 0xa38   :  { %v709_v8 = vadd.f32 %v708_v7, %v658_v6  ;;  %v1471_v10 = vpop.f32.mrb[13].mxu1 }
 0xa39   :  { %v711_v11 = vpop.f32.mrb[14].mxu1 }
 0xa3a   :  { %v2089_v13 = vadd.f32 %v709_v8, %v610_v26  ;;  %v712_v14 = vadd.f32 %v711_v11, %v658_v6  ;;  %v1472_v15 = vpop.f32.mrb[15].mxu1 }
 0xa3c   :  { %v2091_v16 = vadd.f32 %v712_v14, %v611_v29  ;;  %v719_v17 = vsel %vm140_vm1, %v2089_v13, 0.0  ;;  %v1565_v29 = vld [vmem:[%s2222_s5 + $0x10] sm:$0xff]  }
 0xa3d   :  { %720 = vadd.xlane.f32.xlu0 %v719_v17  ;;  %1474 = vmatpush3.bf16.msra.mxu0 %v1565_v29 }
 0xa3e   :  { %v722_v18 = vsel %vm140_vm1, %v2091_v16, 0.0  ;;  %1475 = vmatprep.subr.bf16.mxu0 %v1795_v0 }
 0xa3f   :  { %723 = vadd.xlane.f32.xlu1 %v722_v18 }
 0xa41   :  { %1476 = vmatpush3.bf16.msra.mxu0 %v1566_v30 }
 0xa42   :  { %1487 = vmatprep.subr.bf16.mxu0 %v1795_v0 }
 0xaca   :  { %v721_v19 = vpop.xlane.xlu0 %720 }
 0xacb   :  { %v725_v37 = vmul.f32 0.03125, %v721_v19 }
 0xacc   :  { %v724_v21 = vpop.xlane.xlu1 %723 }
 0xacd   :  { %v727_v22 = vsub.f32 %v2089_v13, %v725_v37  ;;  %v726_v23 = vmul.f32 0.03125, %v724_v21 }
 0xacf   :  { %v728_v24 = vsub.f32 %v2091_v16, %v726_v23  ;;  %v729_v25 = vmul.f32 %v727_v22, %v727_v22 }
 0xad1   :  { %v731_v26 = vsel %vm140_vm1, %v729_v25, 0.0  ;;  %v730_v27 = vmul.f32 %v728_v24, %v728_v24 }
 0xad2   :  { %732 = vadd.xlane.f32.xlu0 %v731_v26 }
 0xad3   :  { %v734_v28 = vsel %vm140_vm1, %v730_v27, 0.0 }
 0xad4   :  { %735 = vadd.xlane.f32.xlu1 %v734_v28 }
 0xb5f   :  { %v733_v31 = vpop.xlane.xlu0 %732 }
 0xb60   :  { %v737_v32 = vmul.f32 0.03125, %v733_v31 }
 0xb61   :  { %v736_v33 = vpop.xlane.xlu1 %735 }
 0xb62   :  { %v739_v34 = vadd.f32 1e-05, %v737_v32  ;;  %v738_v38 = vmul.f32 0.03125, %v736_v33 }
 0xb64   :  { %1597 = vrsqrt.f32 %v739_v34  ;;  %v740_v39 = vadd.f32 1e-05, %v738_v38 }
 0xb66   :  { %1599 = vrsqrt.f32 %v740_v39 }
 0xb6e   :  { %v1598_v43 = vpop.eup %1597 }
 0xb6f   :  { %v743_v9 = vmul.f32 %v1598_v43, %v727_v22 }
 0xb70   :  { %v1600_v44 = vpop.eup %1599 }
 0xb71   :  { %v749_v45 = vmul.f32 %v748_v42, %v743_v9  ;;  %v744_v46 = vmul.f32 %v1600_v44, %v728_v24 }
 0xb73   :  { %v750_v47 = vmul.f32 %v748_v42, %v744_v46  ;;  %v755_v48 = vadd.f32 %v754_v12, %v749_v45 }
 0xb75   :  { %v756_v49 = vadd.f32 %v754_v12, %v750_v47 }
 0xb77   :  { %v757_v51 = vpack.c.bf16 %v756_v49, %v755_v48 }
 0xb79   :  { %1478 = vmatmul.mubr.msk.bf16.vlgmr.msra.gmra.mrb[16].mxu0 %vm140_vm1, %v757_v51 }
 0xb7a   :  { %1489 = vmatprep.mubr.msk.bf16.mxu0 %vm1796_vm0, %v1795_v0 }
 0xc4c   :  { %v816_v52 = vpop.f32.mrb[16].mxu0 }
 0xc4d   :  { %v1479_v54 = vpop.f32.mrb[17].mxu0  ;;  %v817_v57 = vadd.f32 %v816_v52, %v766_v36 }
 0xc4e   :  { %v819_v56 = vpop.f32.mrb[18].mxu0 }
 0xc4f   :  { %v820_v41 = vadd.f32 %v819_v56, %v766_v36  ;;  %v1480_v58 = vpop.f32.mrb[19].mxu0 }
 0xc51   :  { %v2126_v59 = vpack.c.bf16 %v820_v41, %v817_v57 }
 0xc53   :  { %946 = vrot.lane.b32.xlu1 %v2126_v59, %s1797_s3  ;;  %825 = vrot.lane.b32.xlu0 %v2126_v59, %s1798_s16 }
 0xc57   :  { %944 = vrot.lane.b32.xlu1 %v2126_v59, %s1799_s14 }
 0xcc5   :  { %v826_v60 = vpop.permute.xlu0 %825  ;;  %v947_v61 = vpop.permute.xlu1 %946 }
 0xcc6   :  { %v831_v50 = vsel %vm296_vm2, %v826_v60, 0  ;;  %v952_v62 = vsel %vm296_vm2, %v947_v61, 0  ;;  %v1567_v61 = vld [vmem:[#allocation8 + $0x10] sm:$0xff]  }
 0xcc7   :  { %1482 = vmatpush3.bf16.xpose.msra.mxu1 %v831_v50 }
 0xcc8   :  { %1493 = vmatprep.subr.bf16.mxu1 %v1795_v0 }
 0xcc9   :  { %v945_v63 = vpop.permute.xlu1 %944 }
 0xcce   :  { %1484 = vmatmul.mubr.msk.bf16.vlgmr.msra.gmra.mrb[16].mxu1 %vm296_vm2, %v2126_v59 }
 0xccf   :  { %1494 = vmatpush3.bf16.xpose.msra.mxu1 %v952_v62  ;;  %1495 = vmatprep.mubr.msk.bf16.mxu1 %vm1796_vm0, %v1795_v0 }
 0xcd0   :  { %1505 = vmatprep.subr.bf16.mxu1 %v1795_v0 }
 0xcd6   :  { %1496 = vmatmul.mubr.msk.bf16.vlgmr.msra.gmra.mrb[20].mxu1 %vm296_vm2, %v945_v63 }
 0xcd7   :  { %1509 = vmatprep.mubr.msk.bf16.mxu1 %vm1796_vm0, %v1795_v0  ;;  %1506 = vmatpush3.bf16.msra.mxu1 %v1567_v61  ;;  %v1190_v61 = vrot.slane %v2112_v40, %v657_v5 }
 0xcd8   :  { %1507 = vmatprep.subr.bf16.mxu1 %v1795_v0 }
 0xda1   :  { %v867_v2 = vpop.f32.mrb[16].mxu1 }
 0xda2   :  { %v868_v4 = vadd.f32 %v867_v2, %v2026_v1  ;;  %v1485_v6 = vpop.f32.mrb[17].mxu1 }
 0xda3   :  { %v870_v7 = vpop.f32.mrb[18].mxu1  ;;  %v1568_v6 = vld [vmem:[#allocation8 + $0x18] sm:$0xff]  }
 0xda4   :  { %v871_v8 = vadd.f32 %v870_v7, %v2028_v3  ;;  %v1486_v10 = vpop.f32.mrb[19].mxu1  ;;  %v874_v11 = vsel %vm296_vm2, %v868_v4, -inf  ;;  %1508 = vmatpush3.bf16.msra.mxu1 %v1568_v6 }
 0xda5   :  { %875 = vmax.xlane.f32.xlu1 %v874_v11  ;;  %1521 = vmatprep.subr.bf16.mxu1 %v1795_v0 }
 0xda6   :  { %v877_v14 = vsel %vm296_vm2, %v871_v8, -inf }
 0xda7   :  { %878 = vmax.xlane.f32.xlu0 %v877_v14 }
 0xda9   :  { %v988_v15 = vpop.f32.mrb[20].mxu1 }
 0xdaa   :  { %v989_v17 = vadd.f32 %v988_v15, %v2026_v1  ;;  %v1497_v18 = vpop.f32.mrb[21].mxu1 }
 0xdab   :  { %v991_v19 = vpop.f32.mrb[22].mxu1 }
 0xdac   :  { %v992_v37 = vadd.f32 %v991_v19, %v2028_v3  ;;  %v1498_v21 = vpop.f32.mrb[23].mxu1  ;;  %v995_v22 = vsel %vm296_vm2, %v989_v17, -inf }
 0xdad   :  { %996 = vmax.xlane.f32.xlu0 %v995_v22  ;;  %v1084_v22 = vrot.slane %v2112_v40, %v552_v20 }
 0xdae   :  { %v998_v23 = vsel %vm296_vm2, %v992_v37, -inf }
 0xdb1   :  { %999 = vmax.xlane.f32.xlu0 %v998_v23 }
 0xe32   :  { %v876_v24 = vpop.xlane.xlu1 %875 }
 0xe33   :  { %v880_v25 = vsub.f32 %v868_v4, %v876_v24 }
 0xe34   :  { %v879_v26 = vpop.xlane.xlu0 %878 }
 0xe35   :  { %v882_v27 = vmul.f32 1.442695, %v880_v25  ;;  %v881_v28 = vsub.f32 %v871_v8, %v879_v26 }
 0xe37   :  { %1601 = vpow2.f32 %v882_v27  ;;  %v884_v29 = vmul.f32 1.442695, %v881_v28 }
 0xe39   :  { %1603 = vpow2.f32 %v884_v29 }
 0xe3a   :  { %v997_v1 = vpop.xlane.xlu0 %996 }
 0xe3b   :  { %v1001_v30 = vsub.f32 %v989_v17, %v997_v1 }
 0xe3d   :  { %v1003_v31 = vmul.f32 1.442695, %v1001_v30 }
 0xe3e   :  { %v1000_v32 = vpop.xlane.xlu0 %999 }
 0xe3f   :  { %1605 = vpow2.f32 %v1003_v31  ;;  %v1002_v3 = vsub.f32 %v992_v37, %v1000_v32 }
 0xe41   :  { %v1602_v33 = vpop.eup %1601  ;;  %v1005_v34 = vmul.f32 1.442695, %v1002_v3 }
 0xe42   :  { %v886_v38 = vsel %vm296_vm2, %v1602_v33, 0.0 }
 0xe43   :  { %v1604_v39 = vpop.eup %1603  ;;  %1607 = vpow2.f32 %v1005_v34  ;;  %887 = vadd.xlane.f32.xlu1 %v886_v38 }
 0xe44   :  { %v889_v42 = vsel %vm296_vm2, %v1604_v39, 0.0 }
 0xe45   :  { %890 = vadd.xlane.f32.xlu0 %v889_v42 }
 0xe49   :  { %v1606_v43 = vpop.eup %1605 }
 0xe4a   :  { %v1007_v9 = vsel %vm296_vm2, %v1606_v43, 0.0 }
 0xe4b   :  { %1008 = vadd.xlane.f32.xlu1 %v1007_v9  ;;  %v1570_v9 = vld [vmem:[#allocation10 + $0x18] sm:$0xff]  }
 0xe4d   :  { %v1608_v44 = vpop.eup %1607 }
 0xe4e   :  { %v1010_v12 = vsel %vm296_vm2, %v1608_v44, 0.0 }
 0xe4f   :  { %1011 = vadd.xlane.f32.xlu0 %v1010_v12 }
 0xe5c   :  { %897 = vrot.lane.b32.xlu1 %v2126_v59, %s1786_s23  ;;  %s1802_s23 = smov [#allocation13]  }
 0xe5d   :  { %s1324_s27 = sshll.u32 %s1802_s23, 4  ;;  %s1325_s27 = int_to_ptr.vmem [resolvable:$true] %s1324_s27 }
 0xe5e   :  { %s1753_s7 = scalar_lea.vmem %s1325_s27, 256  ;;  %p1758_p7 = scmp.lt.s32.totalorder %s1325_s27, %s1325_s27 }
 0xe5f   :  { %p1754_p6 = scmp.ne.s32.totalorder %s1325_s27, %s1753_s7  ;;  %p1759_p8 = scmp.lt.s32.totalorder %s1753_s7, %s1753_s7 }
 0xe61   :  { %p1760_p9 = por %p1759_p8, %p1758_p7 }
 0xe63   :  { %p1761_p10 = pnand %p1760_p9, %p1754_p6 }
 0xe65   :  { %1018 = vrot.lane.b32.xlu0 %v2126_v59, %s1800_s19 }
 0xed0   :  { %v888_v45 = vpop.xlane.xlu1 %887 }
 0xed1   :  { %1609 = vrcp.f32 %v888_v45 }
 0xed2   :  { %v891_v46 = vpop.xlane.xlu0 %890 }
 0xed3   :  { %1611 = vrcp.f32 %v891_v46 }
 0xed8   :  { %v1009_v47 = vpop.xlane.xlu1 %1008 }
 0xed9   :  { %1613 = vrcp.f32 %v1009_v47 }
 0xedb   :  { %v1610_v48 = vpop.eup %1609 }
 0xedc   :  { %v898_v49 = vpop.permute.xlu1 %897  ;;  %v1012_v51 = vpop.xlane.xlu0 %1011  ;;  %v893_v52 = vmul.f32 %v1610_v48, %v1602_v33 }
 0xedd   :  { %v1612_v36 = vpop.eup %1611  ;;  %1615 = vrcp.f32 %v1012_v51  ;;  %1488 = vmatpush3.bf16.msra.mxu0 %v898_v49  ;;  %v1172_v49 = vrot.slane %v2112_v40, %v640_v53  ;;  %v1572_v53 = vld [vmem:[#allocation11 + $0x8] sm:$0xff]  }
 0xede   :  { %v895_v54 = vmul.f32 %v1612_v36, %v1604_v39  ;;  %1499 = vmatprep.subr.bf16.mxu0 %v1795_v0 }
 0xee0   :  { %v1019_v56 = vpop.permute.xlu0 %1018  ;;  %v896_v57 = vpack.c.bf16 %v895_v54, %v893_v52 }
 0xee2   :  { %1490 = vmatmul.mubr.msk.bf16.vlgmr.msra.gmra.mrb[20].mxu0 %vm296_vm2, %v896_v57  ;;  %v1178_v57 = vrot.slane %v2112_v40, %v646_v55 }
 0xee3   :  { %1500 = vmatpush3.bf16.msra.mxu0 %v1019_v56  ;;  %1501 = vmatprep.mubr.msk.bf16.mxu0 %vm1796_vm0, %v1795_v0  ;;  %v1614_v41 = vpop.eup %1613 }
 0xee4   :  { %1513 = vmatprep.subr.bf16.mxu0 %v1795_v0  ;;  %v1014_v59 = vmul.f32 %v1614_v41, %v1606_v43 }
 0xee7   :  { %v1616_v58 = vpop.eup %1615 }
 0xee8   :  { %v1016_v60 = vmul.f32 %v1616_v58, %v1608_v44 }
 0xeea   :  { %v1017_v50 = vpack.c.bf16 %v1016_v60, %v1014_v59 }
 0xeec   :  { %1502 = vmatmul.mubr.msk.bf16.vlgmr.msra.gmra.mrb[24].mxu0 %vm296_vm2, %v1017_v50  ;;  %v1571_v50 = vld [vmem:[#allocation11] sm:$0xff]  }
 0xeed   :  { %1517 = vmatprep.mubr.msk.bf16.mxu0 %vm1796_vm0, %v1795_v0 }
 0xfb5   :  { %v937_v62 = vpop.f32.mrb[20].mxu0 }
 0xfb6   :  { %v1491_v63 = vpop.f32.mrb[21].mxu0 }
 0xfb7   :  { %v940_v2 = vpop.f32.mrb[22].mxu0 }
 0xfb8   :  { %v1492_v4 = vpop.f32.mrb[23].mxu0 }
 0xfbf   :  { %v1058_v7 = vpop.f32.mrb[24].mxu0 }
 0xfc0   :  { %v1503_v8 = vpop.f32.mrb[25].mxu0 }
 0xfc1   :  { %v1061_v10 = vpop.f32.mrb[26].mxu0 }
 0xfc2   :  { %v1552_v11 = vpack.i.bf16 %v1061_v10, %v1058_v7  ;;  %v1504_v14 = vpop.f32.mrb[27].mxu0 }
 0xfc4   :  { %1553 = vrot.lane.b32.xlu1 %v1552_v11, %s1801_s20 }
0x1036   :  { %v1554_v15 = vpop.permute.xlu1 %1553 }
0x1037   :  { %v1556_v17 = vunpack.i.h.bf16 %v1554_v15  ;;  %v1555_v18 = vunpack.i.l.bf16 %v1554_v15 }
0x1039   :  { %v1074_v19 = vsel %vm296_vm2, %v940_v2, %v1556_v17  ;;  %v1073_v37 = vsel %vm296_vm2, %v937_v62, %v1555_v18 }
0x103a   :  { %v1075_v21 = vpack.c.bf16 %v1074_v19, %v1073_v37 }
0x103c   :  { %1510 = vmatmul.mubr.msk.bf16.vlgmr.msra.gmra.mrb[24].mxu1 %vm140_vm1, %v1075_v21 }
0x103d   :  { %1525 = vmatprep.mubr.msk.bf16.mxu1 %vm1796_vm0, %v1795_v0  ;;  %1522 = vmatpush3.bf16.msra.mxu1 %v1571_v50 }
0x103e   :  { %1523 = vmatprep.subr.bf16.mxu1 %v1795_v0 }
0x1041   :  { %1524 = vmatpush3.bf16.msra.mxu1 %v1572_v53 }
0x110f   :  { %v1134_v23 = vpop.f32.mrb[24].mxu1 }
0x1110   :  { %v1135_v24 = vadd.f32 %v1134_v23, %v1084_v22  ;;  %v1511_v25 = vpop.f32.mrb[25].mxu1 }
0x1111   :  { %v1137_v26 = vpop.f32.mrb[26].mxu1 }
0x1112   :  { %v1141_v27 = vadd.f32 %v1135_v24, %v2089_v13  ;;  %v1138_v28 = vadd.f32 %v1137_v26, %v1084_v22  ;;  %v1512_v29 = vpop.f32.mrb[27].mxu1 }
0x1114   :  { %v1142_v1 = vadd.f32 %v1138_v28, %v2091_v16  ;;  %v1143_v30 = vsel %vm140_vm1, %v1141_v27, 0.0  ;;  %v1569_v16 = vld [vmem:[#allocation10 + $0x10] sm:$0xff]  }
0x1115   :  { %1144 = vadd.xlane.f32.xlu1 %v1143_v30  ;;  %1514 = vmatpush3.bf16.msra.mxu0 %v1569_v16 }
0x1116   :  { %v1146_v31 = vsel %vm140_vm1, %v1142_v1, 0.0  ;;  %1515 = vmatprep.subr.bf16.mxu0 %v1795_v0  ;;  %v1373_v0 = vld [vmem:[%s2226_s9] ss:$0 sm:$0xff] }
0x1117   :  { %1147 = vadd.xlane.f32.xlu0 %v1146_v31 }
0x1119   :  { %1516 = vmatpush3.bf16.msra.mxu0 %v1570_v9 }
0x11a2   :  { %v1145_v32 = vpop.xlane.xlu1 %1144 }
0x11a3   :  { %v1149_v3 = vmul.f32 0.03125, %v1145_v32 }
0x11a4   :  { %v1148_v33 = vpop.xlane.xlu0 %1147 }
0x11a5   :  { %v1151_v20 = vsub.f32 %v1141_v27, %v1149_v3  ;;  %v1150_v34 = vmul.f32 0.03125, %v1148_v33 }
0x11a7   :  { %v1152_v38 = vsub.f32 %v1142_v1, %v1150_v34  ;;  %v1153_v39 = vmul.f32 %v1151_v20, %v1151_v20 }
0x11a9   :  { %v1155_v42 = vsel %vm140_vm1, %v1153_v39, 0.0  ;;  %v1154_v13 = vmul.f32 %v1152_v38, %v1152_v38 }
0x11aa   :  { %1156 = vadd.xlane.f32.xlu0 %v1155_v42 }
0x11ab   :  { %v1158_v43 = vsel %vm140_vm1, %v1154_v13, 0.0 }
0x11ac   :  { %1159 = vadd.xlane.f32.xlu1 %v1158_v43 }
0x1237   :  { %v1157_v44 = vpop.xlane.xlu0 %1156 }
0x1238   :  { %v1161_v12 = vmul.f32 0.03125, %v1157_v44 }
0x1239   :  { %v1160_v45 = vpop.xlane.xlu1 %1159 }
0x123a   :  { %v1163_v46 = vadd.f32 1e-05, %v1161_v12  ;;  %v1162_v47 = vmul.f32 0.03125, %v1160_v45 }
0x123c   :  { %1617 = vrsqrt.f32 %v1163_v46  ;;  %v1164_v48 = vadd.f32 1e-05, %v1162_v47 }
0x123e   :  { %1619 = vrsqrt.f32 %v1164_v48 }
0x1246   :  { %v1618_v51 = vpop.eup %1617 }
0x1247   :  { %v1167_v36 = vmul.f32 %v1618_v51, %v1151_v20 }
0x1248   :  { %v1620_v52 = vpop.eup %1619 }
0x1249   :  { %v1173_v54 = vmul.f32 %v1172_v49, %v1167_v36  ;;  %v1168_v56 = vmul.f32 %v1620_v52, %v1152_v38 }
0x124b   :  { %v1174_v41 = vmul.f32 %v1172_v49, %v1168_v56  ;;  %v1179_v58 = vadd.f32 %v1178_v57, %v1173_v54 }
0x124d   :  { %v1180_v59 = vadd.f32 %v1178_v57, %v1174_v41 }
0x124f   :  { %v1181_v60 = vpack.c.bf16 %v1180_v59, %v1179_v58 }
0x1251   :  { %1518 = vmatmul.mubr.msk.bf16.vlgmr.msra.gmra.mrb[28].mxu0 %vm140_vm1, %v1181_v60 }
0x1324   :  { %v1240_v62 = vpop.f32.mrb[28].mxu0 }
0x1325   :  { %v1241_v63 = vadd.f32 %v1240_v62, %v1190_v61  ;;  %v1519_v2 = vpop.f32.mrb[29].mxu0 }
0x1326   :  { %v1243_v55 = vpop.f32.mrb[30].mxu0 }
0x1327   :  { %v1244_v4 = vadd.f32 %v1243_v55, %v1190_v61  ;;  %v1520_v6 = vpop.f32.mrb[31].mxu0  ;;  %v1247_v7 = vadd.f32 %v1241_v63, %v1141_v27 }
0x1329   :  { %v1248_v8 = vadd.f32 %v1244_v4, %v1142_v1 }
0x132b   :  { %v1249_v10 = vpack.c.bf16 %v1248_v8, %v1247_v7 }
0x132d   :  { %1526 = vmatmul.mubr.msk.bf16.vlgmr.msra.gmra.mrb[28].mxu1 %vm140_vm1, %v1249_v10 }
0x1400   :  { %v1310_v11 = vpop.f32.mrb[28].mxu1 }
0x1401   :  { %v1311_v35 = vadd.f32 %v1373_v0, %v1310_v11  ;;  %v1527_v5 = vpop.f32.mrb[29].mxu1 }
0x1402   :  { %v1313_v40 = vpop.f32.mrb[30].mxu1 }
0x1403   :  { %1317 = vst [vmem:[#allocation13] sm:$0xff] %v1311_v35  ;;  %v1314_v14 = vadd.f32 %v1373_v0, %v1313_v40  ;;  %v1528_v15 = vpop.f32.mrb[31].mxu1 }
0x1405   :  { %1318 = vst [vmem:[#allocation13 + $0x8] sm:$0xff] %v1314_v14 }
0x1406   :  { %1764 = shalt.err (!%p1761_p10)
}
0x1407   :  { %s1765_s8 = scalar_lea.hbm %s2227_s10, 256 }
0x1408   :  { %p1766_p11 = scmp.ne.s32.totalorder %s2227_s10, %s1765_s8  ;;  %p1769_p12 = scmp.lt.u32.totalorder %s1765_s8, %s2227_s10 }
0x140a   :  { %p1771_p13 = pnand %p1769_p12, %p1766_p11 }
0x140c   :  { %1774 = shalt.err (!%p1771_p13)
}
0x140d   :  { %1330 = dma.vmem_to_hbm [thread:$0]  %s1325_s27, 256, %s2227_s10, [#allocation4], %s1790_s6, %s1790_s6, %s1791_s28  }
0x140e   :  { %1783 = dma.done.wait [#allocation4], 256  }
0x140f   :  { %1784 = vsyncadd [#allocation4], 4294967040 }
0x1410   :  { %1334 = vsyncpa [#allocation3], 1 }
0x1411   :  { %1335 = vsyncpa [#allocation6], 1 }
0x1412   :  { %1336 = vsyncpa [#allocation9], 1 }
0x1413   :  { %1337 = vsyncpa [#allocation12], 1 }
0x1414   :  { %1338 = vsyncpa [#allocation4], 1 }

</bundles_post_ra>
